<compile_context>
chip_gen: v7x
topology: tpu7x:2x2x1
jax: 0.10.0
libtpu: 0.0.40
codegen_flags: <defaults>
</compile_context>

<pallas_src>
import functools

import jax
import jax.numpy as jnp
from jax.experimental import pallas as pl
from jax.experimental.pallas import tpu as pltpu


def _round_up(x, m):
    return (x + m - 1) // m * m


def _vmem_cap_bytes():
    """Generation-aware VMEM ceiling: ~75% of physical, 48 MiB fallback."""
    try:
        info = pltpu.get_tpu_info()
        cap = getattr(info, "vmem_capacity_bytes", None)
        if cap:
            return int(cap) * 3 // 4
    except Exception:
        pass
    return 48 << 20  # safe on v5e/v6e (128 MiB) and v7x (64 MiB physical)


def _make_kernel(num_residual_blocks):
    """Fused MLP kernel (static unroll over residual blocks).

    Matmul operands are bf16, accumulation + elementwise math is f32.
    """

    def kernel(x_ref, w_in_ref, b_in_ref, *rest):
        res_refs = rest[: 4 * num_residual_blocks]
        w_out_ref, b_out_ref, o_ref = rest[4 * num_residual_blocks:]

        # Stem: Linear(D, H) -> ReLU -> (Dropout = identity, eval mode).
        # x_ref is already bf16 (cast in the wrapper), w_in is bf16.
        h = (jnp.dot(x_ref[...], w_in_ref[...],
                     preferred_element_type=jnp.float32)
             + b_in_ref[...])
        h = jnp.maximum(h, 0.0)

        # Residual blocks (in_features == out_features, so skip is Identity).
        for blk in range(num_residual_blocks):
            w1, b1, w2, b2 = res_refs[4 * blk: 4 * blk + 4]
            identity = h
            out = jnp.dot(h.astype(jnp.bfloat16), w1[...],
                          preferred_element_type=jnp.float32) + b1[...]
            out = jnp.maximum(out, 0.0)          # ReLU; Dropout = identity
            out = jnp.dot(out.astype(jnp.bfloat16), w2[...],
                          preferred_element_type=jnp.float32) + b2[...]
            h = jnp.maximum(out + identity, 0.0)

        # Head: Linear(H, O) -- unpadded store (O == full last dim).
        o_ref[...] = (jnp.dot(h.astype(jnp.bfloat16), w_out_ref[...],
                              preferred_element_type=jnp.float32)
                      + b_out_ref[...]).astype(o_ref.dtype)

    return kernel


def prepare_params(params):
    """One-time parameter prep (hoisted out of the per-call forward path).

    Returns a flat tuple:
      (w_in bf16 (D,H), b_in f32 (1,H),
       [w1 bf16, b1 f32, w2 bf16, b2 f32] * num_residual_blocks,
       w_out bf16 (H,O), b_out f32 (1,O))
    """
    bf16, f32 = jnp.bfloat16, jnp.float32
    flat = [params["w_in"].astype(bf16), params["b_in"].astype(f32)]
    for (w1, b1, w2, b2) in params["res"]:
        flat += [w1.astype(bf16), b1.astype(f32),
                 w2.astype(bf16), b2.astype(f32)]
    flat += [params["w_out"].astype(bf16), params["b_out"].astype(f32)]
    return tuple(flat)


def aggregate_net_forward(x1, x2, prepped, *, num_residual_blocks,
                          tile_b=None):
    """Pallas-backed forward pass of AggregateNet.

    `prepped` is the flat tuple produced by prepare_params().
    """
    B, D1 = x1.shape
    _, D2 = x2.shape
    D = D1 + D2
    w_in = prepped[0]
    H = w_in.shape[1]
    w_out = prepped[-2]
    O = w_out.shape[1]
    num_params = len(prepped)
    assert num_params == 4 + 4 * num_residual_blocks

    # Batch tile: multiple of 8 sublanes.  Default targets a 2-step grid
    # (one batch shard per v7x TensorCore; on v5e/v6e the extra step costs
    # one ~0.35 us grid-step overhead), with each tile capped at 1024 rows
    # to keep the unrolled residual chain's live f32 activations in-vreg.
    if tile_b is None:
        if B <= 8:
            tile_b = 8
        else:
            tile_b = min(1024, _round_up(pl.cdiv(B, 2), 8))
    grid = (pl.cdiv(B, tile_b),)

    # Fuse torch.cat in the wrapper (D is tiny, <=16 KiB round trip) and ship
    # bf16 inputs: halves the x-tile DMA bytes and drops the in-kernel cast.
    x = jnp.concatenate([x1, x2], axis=1).astype(jnp.bfloat16)

    def weight_spec(arr):
        # Whole-array block, constant block index -> stays VMEM-resident
        # across grid steps (no re-fetch).
        return pl.BlockSpec(arr.shape, lambda i: (0, 0))

    in_specs = [pl.BlockSpec((tile_b, D), lambda i: (i, 0))]
    in_specs += [weight_spec(p) for p in prepped]
    out_spec = pl.BlockSpec((tile_b, O), lambda i: (i, 0))

    # Advisory cost estimate for the XLA scheduler.
    flops = 2 * B * (D * H + 2 * num_residual_blocks * H * H + H * O)
    weight_bytes = sum(int(p.size) * p.dtype.itemsize for p in prepped)
    bytes_accessed = B * D * 2 + B * O * 4 + weight_bytes
    cost = pl.CostEstimate(flops=flops, transcendentals=0,
                           bytes_accessed=bytes_accessed)

    # Scoped-VMEM budget: double-buffered x/out tiles + (default-buffered)
    # resident weights + f32 activation scratch + headroom, capped at a
    # generation-aware fraction of physical VMEM.
    tile_bytes = tile_b * D * 2 + tile_b * O * 4
    act_bytes = 4 * tile_b * H * 4
    vmem_limit = 2 * weight_bytes + 2 * tile_bytes + act_bytes + (4 << 20)
    vmem_limit = int(min(max(vmem_limit, 8 << 20), _vmem_cap_bytes()))

    out = pl.pallas_call(
        _make_kernel(num_residual_blocks),
        out_shape=jax.ShapeDtypeStruct((B, O), jnp.float32),
        grid=grid,
        in_specs=in_specs,
        out_specs=out_spec,
        compiler_params=pltpu.CompilerParams(
            dimension_semantics=("parallel",),
            vmem_limit_bytes=vmem_limit),
        cost_estimate=cost,
    )(x, *prepped)

    return out


def aggregate_net_reference(x1, x2, params):
    """Pure-JAX reference mirroring the kernel numerics (bf16 matmul operands,
    f32 accumulation/elementwise, Dropout = identity / eval mode)."""
    bf16 = jnp.bfloat16

    def mm(a, w):
        return jnp.dot(a.astype(bf16), w.astype(bf16),
                       preferred_element_type=jnp.float32)

    x = jnp.concatenate([x1, x2], axis=1)
    h = jnp.maximum(mm(x, params["w_in"]) + params["b_in"], 0.0)
    for (w1, b1, w2, b2) in params["res"]:
        identity = h
        out = jnp.maximum(mm(h, w1) + b1, 0.0)
        out = mm(out, w2) + b2
        h = jnp.maximum(out + identity, 0.0)
    return mm(h, params["w_out"]) + params["b_out"]


def init_params(key, input_dim, hidden_dim, output_dim, num_residual_blocks):
    """Deterministic synthetic parameter init (shapes match the nn.Module)."""
    keys = jax.random.split(key, 4 + 4 * num_residual_blocks)
    k = iter(keys)

    def lin(kw, fan_in, fan_out):
        scale = 1.0 / jnp.sqrt(jnp.float32(fan_in))
        return jax.random.uniform(kw, (fan_in, fan_out), jnp.float32,
                                  -scale, scale)

    params = {}
    params["w_in"] = lin(next(k), input_dim, hidden_dim)
    params["b_in"] = jnp.zeros((1, hidden_dim), jnp.float32) + 0.01
    res = []
    for _ in range(num_residual_blocks):
        w1 = lin(next(k), hidden_dim, hidden_dim)
        b1 = jnp.zeros((1, hidden_dim), jnp.float32) + 0.01
        w2 = lin(next(k), hidden_dim, hidden_dim)
        b2 = jnp.zeros((1, hidden_dim), jnp.float32) - 0.01
        res.append((w1, b1, w2, b2))
    params["res"] = res
    params["w_out"] = lin(next(k), hidden_dim, output_dim)
    params["b_out"] = jnp.zeros((1, output_dim), jnp.float32)
    return params


if __name__ == "__main__":
    # x1 and x2 concatenate along features: input_dim = D1 + D2.
    B = 512                 # default tiling -> two 256-row "parallel" tiles
    D1, D2 = 6, 10          # input_dim = 16
    HIDDEN = 32
    OUT = 4
    N_BLOCKS = 2

    key = jax.random.PRNGKey(0)
    kx1, kx2, kp = jax.random.split(key, 3)
    x1 = jax.random.normal(kx1, (B, D1), jnp.float32)
    x2 = jax.random.normal(kx2, (B, D2), jnp.float32)

    params = init_params(kp, D1 + D2, HIDDEN, OUT, N_BLOCKS)
    prepped = prepare_params(params)   # hoisted one-time bf16 casts

    fwd = jax.jit(functools.partial(aggregate_net_forward,
                                    num_residual_blocks=N_BLOCKS))
    out = jax.block_until_ready(fwd(x1, x2, prepped))

    ref = aggregate_net_reference(x1, x2, params)
    assert out.shape == (B, OUT)
    assert jnp.allclose(out, ref, atol=2e-3, rtol=2e-3), "mismatch vs reference"

    print("KERNEL_OK")
</pallas_src>

<mosaic_0001>
module attributes {stable_mosaic.version = 11 : i64} {
  func.func @kernel(%arg0: i32, %arg1: memref<256x16xbf16, #tpu.memory_space<vmem>>, %arg2: memref<16x32xbf16, #tpu.memory_space<vmem>>, %arg3: memref<1x32xf32, #tpu.memory_space<vmem>>, %arg4: memref<32x32xbf16, #tpu.memory_space<vmem>>, %arg5: memref<1x32xf32, #tpu.memory_space<vmem>>, %arg6: memref<32x32xbf16, #tpu.memory_space<vmem>>, %arg7: memref<1x32xf32, #tpu.memory_space<vmem>>, %arg8: memref<32x32xbf16, #tpu.memory_space<vmem>>, %arg9: memref<1x32xf32, #tpu.memory_space<vmem>>, %arg10: memref<32x32xbf16, #tpu.memory_space<vmem>>, %arg11: memref<1x32xf32, #tpu.memory_space<vmem>>, %arg12: memref<32x4xbf16, #tpu.memory_space<vmem>>, %arg13: memref<1x4xf32, #tpu.memory_space<vmem>>, %arg14: memref<256x4xf32, #tpu.memory_space<vmem>>) attributes {dimension_semantics = [#tpu.dimension_semantics<parallel>], iteration_bounds = array<i64: 2>, scalar_prefetch = 0 : i64, scratch_operands = 0 : i64, tpu.core_type = #tpu.core_type<tc>, window_params = [{transform_indices = @transform_0, window_bounds = array<i64: 256, 16>}, {pipeline_mode = #tpu.pipeline_mode<synchronous>, transform_indices = @transform_1, window_bounds = array<i64: 16, 32>}, {pipeline_mode = #tpu.pipeline_mode<synchronous>, transform_indices = @transform_2, window_bounds = array<i64: 1, 32>}, {pipeline_mode = #tpu.pipeline_mode<synchronous>, transform_indices = @transform_3, window_bounds = array<i64: 32, 32>}, {pipeline_mode = #tpu.pipeline_mode<synchronous>, transform_indices = @transform_4, window_bounds = array<i64: 1, 32>}, {pipeline_mode = #tpu.pipeline_mode<synchronous>, transform_indices = @transform_5, window_bounds = array<i64: 32, 32>}, {pipeline_mode = #tpu.pipeline_mode<synchronous>, transform_indices = @transform_6, window_bounds = array<i64: 1, 32>}, {pipeline_mode = #tpu.pipeline_mode<synchronous>, transform_indices = @transform_7, window_bounds = array<i64: 32, 32>}, {pipeline_mode = #tpu.pipeline_mode<synchronous>, transform_indices = @transform_8, window_bounds = array<i64: 1, 32>}, {pipeline_mode = #tpu.pipeline_mode<synchronous>, transform_indices = @transform_9, window_bounds = array<i64: 32, 32>}, {pipeline_mode = #tpu.pipeline_mode<synchronous>, transform_indices = @transform_10, window_bounds = array<i64: 1, 32>}, {pipeline_mode = #tpu.pipeline_mode<synchronous>, transform_indices = @transform_11, window_bounds = array<i64: 32, 4>}, {pipeline_mode = #tpu.pipeline_mode<synchronous>, transform_indices = @transform_12, window_bounds = array<i64: 1, 4>}, {transform_indices = @transform_13, window_bounds = array<i64: 256, 4>}]} {
    %c0 = arith.constant 0 : index
    %c0_0 = arith.constant 0 : index
    %0 = vector.load %arg1[%c0, %c0_0] : memref<256x16xbf16, #tpu.memory_space<vmem>>, vector<256x16xbf16>
    %c0_1 = arith.constant 0 : index
    %c0_2 = arith.constant 0 : index
    %1 = vector.load %arg2[%c0_1, %c0_2] : memref<16x32xbf16, #tpu.memory_space<vmem>>, vector<16x32xbf16>
    %cst = arith.constant dense<0.000000e+00> : vector<256x32xf32>
    %2 = tpu.matmul %0, %1, %cst {dimension_numbers = #tpu.dot_dimension_numbers<[1], [0], [0], [1], [0, 0, 1, 1], [], []>} : vector<256x16xbf16>, vector<16x32xbf16>, vector<256x32xf32> -> vector<256x32xf32>
    %c0_3 = arith.constant 0 : index
    %c0_4 = arith.constant 0 : index
    %3 = vector.load %arg3[%c0_3, %c0_4] : memref<1x32xf32, #tpu.memory_space<vmem>>, vector<1x32xf32>
    %4 = vector.broadcast %3 : vector<1x32xf32> to vector<256x32xf32>
    %5 = arith.addf %2, %4 : vector<256x32xf32>
    %cst_5 = arith.constant 0.000000e+00 : f32
    %6 = vector.broadcast %cst_5 : f32 to vector<256x32xf32>
    %7 = arith.maximumf %5, %6 : vector<256x32xf32>
    %8 = arith.truncf %7 : vector<256x32xf32> to vector<256x32xbf16>
    %c0_6 = arith.constant 0 : index
    %c0_7 = arith.constant 0 : index
    %9 = vector.load %arg4[%c0_6, %c0_7] : memref<32x32xbf16, #tpu.memory_space<vmem>>, vector<32x32xbf16>
    %cst_8 = arith.constant dense<0.000000e+00> : vector<256x32xf32>
    %10 = tpu.matmul %8, %9, %cst_8 {dimension_numbers = #tpu.dot_dimension_numbers<[1], [0], [0], [1], [0, 0, 1, 1], [], []>} : vector<256x32xbf16>, vector<32x32xbf16>, vector<256x32xf32> -> vector<256x32xf32>
    %c0_9 = arith.constant 0 : index
    %c0_10 = arith.constant 0 : index
    %11 = vector.load %arg5[%c0_9, %c0_10] : memref<1x32xf32, #tpu.memory_space<vmem>>, vector<1x32xf32>
    %12 = vector.broadcast %11 : vector<1x32xf32> to vector<256x32xf32>
    %13 = arith.addf %10, %12 : vector<256x32xf32>
    %cst_11 = arith.constant 0.000000e+00 : f32
    %14 = vector.broadcast %cst_11 : f32 to vector<256x32xf32>
    %15 = arith.maximumf %13, %14 : vector<256x32xf32>
    %16 = arith.truncf %15 : vector<256x32xf32> to vector<256x32xbf16>
    %c0_12 = arith.constant 0 : index
    %c0_13 = arith.constant 0 : index
    %17 = vector.load %arg6[%c0_12, %c0_13] : memref<32x32xbf16, #tpu.memory_space<vmem>>, vector<32x32xbf16>
    %cst_14 = arith.constant dense<0.000000e+00> : vector<256x32xf32>
    %18 = tpu.matmul %16, %17, %cst_14 {dimension_numbers = #tpu.dot_dimension_numbers<[1], [0], [0], [1], [0, 0, 1, 1], [], []>} : vector<256x32xbf16>, vector<32x32xbf16>, vector<256x32xf32> -> vector<256x32xf32>
    %c0_15 = arith.constant 0 : index
    %c0_16 = arith.constant 0 : index
    %19 = vector.load %arg7[%c0_15, %c0_16] : memref<1x32xf32, #tpu.memory_space<vmem>>, vector<1x32xf32>
    %20 = vector.broadcast %19 : vector<1x32xf32> to vector<256x32xf32>
    %21 = arith.addf %18, %20 : vector<256x32xf32>
    %22 = arith.addf %21, %7 : vector<256x32xf32>
    %cst_17 = arith.constant 0.000000e+00 : f32
    %23 = vector.broadcast %cst_17 : f32 to vector<256x32xf32>
    %24 = arith.maximumf %22, %23 : vector<256x32xf32>
    %25 = arith.truncf %24 : vector<256x32xf32> to vector<256x32xbf16>
    %c0_18 = arith.constant 0 : index
    %c0_19 = arith.constant 0 : index
    %26 = vector.load %arg8[%c0_18, %c0_19] : memref<32x32xbf16, #tpu.memory_space<vmem>>, vector<32x32xbf16>
    %cst_20 = arith.constant dense<0.000000e+00> : vector<256x32xf32>
    %27 = tpu.matmul %25, %26, %cst_20 {dimension_numbers = #tpu.dot_dimension_numbers<[1], [0], [0], [1], [0, 0, 1, 1], [], []>} : vector<256x32xbf16>, vector<32x32xbf16>, vector<256x32xf32> -> vector<256x32xf32>
    %c0_21 = arith.constant 0 : index
    %c0_22 = arith.constant 0 : index
    %28 = vector.load %arg9[%c0_21, %c0_22] : memref<1x32xf32, #tpu.memory_space<vmem>>, vector<1x32xf32>
    %29 = vector.broadcast %28 : vector<1x32xf32> to vector<256x32xf32>
    %30 = arith.addf %27, %29 : vector<256x32xf32>
    %cst_23 = arith.constant 0.000000e+00 : f32
    %31 = vector.broadcast %cst_23 : f32 to vector<256x32xf32>
    %32 = arith.maximumf %30, %31 : vector<256x32xf32>
    %33 = arith.truncf %32 : vector<256x32xf32> to vector<256x32xbf16>
    %c0_24 = arith.constant 0 : index
    %c0_25 = arith.constant 0 : index
    %34 = vector.load %arg10[%c0_24, %c0_25] : memref<32x32xbf16, #tpu.memory_space<vmem>>, vector<32x32xbf16>
    %cst_26 = arith.constant dense<0.000000e+00> : vector<256x32xf32>
    %35 = tpu.matmul %33, %34, %cst_26 {dimension_numbers = #tpu.dot_dimension_numbers<[1], [0], [0], [1], [0, 0, 1, 1], [], []>} : vector<256x32xbf16>, vector<32x32xbf16>, vector<256x32xf32> -> vector<256x32xf32>
    %c0_27 = arith.constant 0 : index
    %c0_28 = arith.constant 0 : index
    %36 = vector.load %arg11[%c0_27, %c0_28] : memref<1x32xf32, #tpu.memory_space<vmem>>, vector<1x32xf32>
    %37 = vector.broadcast %36 : vector<1x32xf32> to vector<256x32xf32>
    %38 = arith.addf %35, %37 : vector<256x32xf32>
    %39 = arith.addf %38, %24 : vector<256x32xf32>
    %cst_29 = arith.constant 0.000000e+00 : f32
    %40 = vector.broadcast %cst_29 : f32 to vector<256x32xf32>
    %41 = arith.maximumf %39, %40 : vector<256x32xf32>
    %42 = arith.truncf %41 : vector<256x32xf32> to vector<256x32xbf16>
    %c0_30 = arith.constant 0 : index
    %c0_31 = arith.constant 0 : index
    %43 = vector.load %arg12[%c0_30, %c0_31] : memref<32x4xbf16, #tpu.memory_space<vmem>>, vector<32x4xbf16>
    %cst_32 = arith.constant dense<0.000000e+00> : vector<256x4xf32>
    %44 = tpu.matmul %42, %43, %cst_32 {dimension_numbers = #tpu.dot_dimension_numbers<[1], [0], [0], [1], [0, 0, 1, 1], [], []>} : vector<256x32xbf16>, vector<32x4xbf16>, vector<256x4xf32> -> vector<256x4xf32>
    %c0_33 = arith.constant 0 : index
    %c0_34 = arith.constant 0 : index
    %45 = vector.load %arg13[%c0_33, %c0_34] : memref<1x4xf32, #tpu.memory_space<vmem>>, vector<1x4xf32>
    %46 = vector.broadcast %45 : vector<1x4xf32> to vector<256x4xf32>
    %47 = arith.addf %44, %46 : vector<256x4xf32>
    %c0_35 = arith.constant 0 : index
    %c0_36 = arith.constant 0 : index
    %48 = vector.load %arg14[%c0_35, %c0_36] : memref<256x4xf32, #tpu.memory_space<vmem>>, vector<256x4xf32>
    tpu.vector_store %arg14[%c0_35, %c0_36], %47 {strides = array<i32>} : memref<256x4xf32, #tpu.memory_space<vmem>>, vector<256x4xf32>,
    return
  }
  func.func @transform_0(%arg0: i32) -> (i32, i32) {
    %c0_i32 = arith.constant 0 : i32
    %c0_i32_0 = arith.constant 0 : i32
    return %arg0, %c0_i32 : i32, i32
  }
  func.func @transform_1(%arg0: i32) -> (i32, i32) {
    %c0_i32 = arith.constant 0 : i32
    %c0_i32_0 = arith.constant 0 : i32
    %c0_i32_1 = arith.constant 0 : i32
    return %c0_i32, %c0_i32_0 : i32, i32
  }
  func.func @transform_2(%arg0: i32) -> (i32, i32) {
    %c0_i32 = arith.constant 0 : i32
    %c0_i32_0 = arith.constant 0 : i32
    %c0_i32_1 = arith.constant 0 : i32
    return %c0_i32, %c0_i32_0 : i32, i32
  }
  func.func @transform_3(%arg0: i32) -> (i32, i32) {
    %c0_i32 = arith.constant 0 : i32
    %c0_i32_0 = arith.constant 0 : i32
    %c0_i32_1 = arith.constant 0 : i32
    return %c0_i32, %c0_i32_0 : i32, i32
  }
  func.func @transform_4(%arg0: i32) -> (i32, i32) {
    %c0_i32 = arith.constant 0 : i32
    %c0_i32_0 = arith.constant 0 : i32
    %c0_i32_1 = arith.constant 0 : i32
    return %c0_i32, %c0_i32_0 : i32, i32
  }
  func.func @transform_5(%arg0: i32) -> (i32, i32) {
    %c0_i32 = arith.constant 0 : i32
    %c0_i32_0 = arith.constant 0 : i32
    %c0_i32_1 = arith.constant 0 : i32
    return %c0_i32, %c0_i32_0 : i32, i32
  }
  func.func @transform_6(%arg0: i32) -> (i32, i32) {
    %c0_i32 = arith.constant 0 : i32
    %c0_i32_0 = arith.constant 0 : i32
    %c0_i32_1 = arith.constant 0 : i32
    return %c0_i32, %c0_i32_0 : i32, i32
  }
  func.func @transform_7(%arg0: i32) -> (i32, i32) {
    %c0_i32 = arith.constant 0 : i32
    %c0_i32_0 = arith.constant 0 : i32
    %c0_i32_1 = arith.constant 0 : i32
    return %c0_i32, %c0_i32_0 : i32, i32
  }
  func.func @transform_8(%arg0: i32) -> (i32, i32) {
    %c0_i32 = arith.constant 0 : i32
    %c0_i32_0 = arith.constant 0 : i32
    %c0_i32_1 = arith.constant 0 : i32
    return %c0_i32, %c0_i32_0 : i32, i32
  }
  func.func @transform_9(%arg0: i32) -> (i32, i32) {
    %c0_i32 = arith.constant 0 : i32
    %c0_i32_0 = arith.constant 0 : i32
    %c0_i32_1 = arith.constant 0 : i32
    return %c0_i32, %c0_i32_0 : i32, i32
  }
  func.func @transform_10(%arg0: i32) -> (i32, i32) {
    %c0_i32 = arith.constant 0 : i32
    %c0_i32_0 = arith.constant 0 : i32
    %c0_i32_1 = arith.constant 0 : i32
    return %c0_i32, %c0_i32_0 : i32, i32
  }
  func.func @transform_11(%arg0: i32) -> (i32, i32) {
    %c0_i32 = arith.constant 0 : i32
    %c0_i32_0 = arith.constant 0 : i32
    %c0_i32_1 = arith.constant 0 : i32
    return %c0_i32, %c0_i32_0 : i32, i32
  }
  func.func @transform_12(%arg0: i32) -> (i32, i32) {
    %c0_i32 = arith.constant 0 : i32
    %c0_i32_0 = arith.constant 0 : i32
    %c0_i32_1 = arith.constant 0 : i32
    return %c0_i32, %c0_i32_0 : i32, i32
  }
  func.func @transform_13(%arg0: i32) -> (i32, i32) {
    %c0_i32 = arith.constant 0 : i32
    %c0_i32_0 = arith.constant 0 : i32
    return %arg0, %c0_i32 : i32, i32
  }
}

</mosaic_0001>

<bundles_post_ra>
// kernel: aggregate_net_forward.1
= control target key start
LH: loop header
LB: loop body
LE: loop exit
PB: predicated region body
PF: predicated region fallthrough
CT: control target
= control target key end

     0   :  { %s2910_s25 = smov 0   ;;  %s3814_s0 = inlined_call_operand.vmem [shape: bf16[512,16], index: 0, kind: input, shape index: {}]   ;;  %s3815_s1 = inlined_call_operand.vmem [shape: bf16[16,32], index: 1, kind: input, shape index: {}]   ;;  %s3816_s2 = inlined_call_operand.vmem [shape: f32[1,32], index: 2, kind: input, shape index: {}]   ;;  %s3817_s3 = inlined_call_operand.vmem [shape: bf16[32,32], index: 3, kind: input, shape index: {}]   ;;  %s3818_s4 = inlined_call_operand.vmem [shape: f32[1,32], index: 4, kind: input, shape index: {}]   ;;  %s3819_s5 = inlined_call_operand.vmem [shape: bf16[32,32], index: 5, kind: input, shape index: {}]   ;;  %s3820_s6 = inlined_call_operand.vmem [shape: f32[1,32], index: 6, kind: input, shape index: {}]   ;;  %s3821_s7 = inlined_call_operand.vmem [shape: bf16[32,32], index: 7, kind: input, shape index: {}]   ;;  %s3822_s8 = inlined_call_operand.vmem [shape: f32[1,32], index: 8, kind: input, shape index: {}]   ;;  %s3823_s9 = inlined_call_operand.vmem [shape: bf16[32,32], index: 9, kind: input, shape index: {}]   ;;  %s3824_s10 = inlined_call_operand.vmem [shape: f32[1,32], index: 10, kind: input, shape index: {}]   ;;  %s3825_s11 = inlined_call_operand.vmem [shape: bf16[32,4], index: 11, kind: input, shape index: {}]   ;;  %s3826_s12 = inlined_call_operand.vmem [shape: f32[1,4], index: 12, kind: input, shape index: {}]   ;;  %s3827_s13 = inlined_call_operand.vmem [shape: f32[512,4], index: 13, kind: output, shape index: {}]  }
   0x1 LB: > { %s2336_s26 = sadd.s32 4294967295, %s2838_s25   ;;  %p2340_p0 = scmp.ge.s32.totalorder %s2838_s25, 1  ;;  %s2838_s25 = sphi %s2910_s25, %s23_s25  }
   0x2   : > { %p388_p1 = scmp.lt.s32.totalorder %s2838_s25, 3 }
   0x4   : > { %p389_p2 = pnand %p2340_p0, %p388_p1 }
   0x5   : > { %v2805_v0 = vld [vmem:[%s3815_s1] sm:$0xff] (!%p389_p2)   ;;  %s2341_s29 = sshll.u32 (!%p389_p2), %s2336_s26, 5  ;;  %vm572_vm0 = vcmask (!%p389_p2), 130048   ;;  %v2823_v18 = vld [vmem:[%s3817_s3 + $0x8] sm:$0xff] (!%p389_p2)   ;;  %vm853_vm1 = vcmask (!%p389_p2), 261120   ;;  %vm2247_vm2 = vcmask (!%p389_p2), 31744  }
   0x6   : > { %392 = sbr.rel (%p389_p2) target bundleno = 1406 (0x57e), region = 72  ;;  %p433_p3 = scmp.lt.s32.totalorder (!%p389_p2), %s2341_s29, 63  ;;  %2583 = vmatprep.subr.bf16.mxu0 (!%p389_p2), %v2805_v0  ;;  %v2822_v17 = vld [vmem:[%s3817_s3] sm:$0xff] (!%p389_p2)   ;;  %v2825_v20 = vld [vmem:[%s3819_s5 + $0x8] sm:$0xff] (!%p389_p2)  }
   0x7   : > { %2584 = vmatpush3.bf16.msra.mxu0 (!%p389_p2), %v2805_v0  ;;  %2617 = vmatprep.subr.bf16.mxu1 (!%p389_p2), %v2822_v17  ;;  %v2824_v19 = vld [vmem:[%s3819_s5] sm:$0xff] (!%p389_p2)  }
   0x8   : > { %2618 = vmatpush3.bf16.msra.mxu1 (!%p389_p2), %v2822_v17  ;;  %2653 = vmatprep.subr.bf16.mxu0 (!%p389_p2), %v2824_v19  ;;  %v2976_v21 = vld [vmem:[%s3816_s2] ss:$0 sm:$0xff] (!%p389_p2) }
   0x9   : > { %2619 = vmatprep.subr.bf16.mxu1 (!%p389_p2), %v2823_v18 }
   0xc   : > { %2620 = vmatpush3.bf16.msra.mxu1 (!%p389_p2), %v2823_v18 }
   0xd   : > { %s3905_s29 = smov (!%p433_p3, %s2341_s29), 63 }
   0xe   : > { %s2342_s30 = sshll.u32 %s3905_s29, 2  ;;  %s2344_s17 = sshll.u32 %s3905_s29, 3 }
   0xf   : > { %s2927_s16 = scalar_lea.vmem %s3814_s0, %s2342_s30  ;;  %s3713_s22 = scalar_lea.vmem %s3827_s13, %s2344_s17 }
  0x10   : > { %v2806_v1 = vld [vmem:[%s2927_s16] sm:$0xff]   ;;  %v2807_v2 = vld [vmem:[%s2927_s16 + $0x8] sm:$0xff]   ;;  %v2808_v3 = vld [vmem:[%s2927_s16 + $0x10] sm:$0xff]  }
  0x11   : > { %2585 = vmatprep.mubr.msk.bf16.mxu0 %vm572_vm0, %v2806_v1  ;;  %v2809_v4 = vld [vmem:[%s2927_s16 + $0x18] sm:$0xff]   ;;  %v2810_v5 = vld [vmem:[%s2927_s16 + $0x20] sm:$0xff]   ;;  %v2811_v6 = vld [vmem:[%s2927_s16 + $0x28] sm:$0xff]  }
  0x12   : > { %2586 = vmatmul.mubr.msk.bf16.vlgmr.msra.gmra.mrb[0].mxu0 %vm572_vm0, %v2807_v2  ;;  %v2812_v7 = vld [vmem:[%s2927_s16 + $0x30] sm:$0xff]   ;;  %v2813_v8 = vld [vmem:[%s2927_s16 + $0x38] sm:$0xff]   ;;  %v2814_v9 = vld [vmem:[%s2927_s16 + $0x40] sm:$0xff]  }
  0x13   : > { %2589 = vmatprep.mubr.msk.bf16.mxu0 %vm572_vm0, %v2808_v3  ;;  %v2815_v10 = vld [vmem:[%s2927_s16 + $0x48] sm:$0xff]   ;;  %v2816_v11 = vld [vmem:[%s2927_s16 + $0x50] sm:$0xff]   ;;  %v2817_v12 = vld [vmem:[%s2927_s16 + $0x58] sm:$0xff]   ;;  %2654 = vmatpush3.bf16.msra.mxu0 %v2824_v19 }
  0x14   : > { %v2818_v13 = vld [vmem:[%s2927_s16 + $0x60] sm:$0xff]   ;;  %v2819_v14 = vld [vmem:[%s2927_s16 + $0x68] sm:$0xff]   ;;  %v2820_v15 = vld [vmem:[%s2927_s16 + $0x70] sm:$0xff]   ;;  %2655 = vmatprep.subr.bf16.mxu0 %v2825_v20 }
  0x15   : > { %v2821_v16 = vld [vmem:[%s2927_s16 + $0x78] sm:$0xff]  }
  0x17   : > { %2656 = vmatpush3.bf16.msra.mxu0 %v2825_v20 }
  0x1a   : > { %2590 = vmatmul.mubr.msk.bf16.gmra.mrb[4].mxu0 %vm572_vm0, %v2809_v4 }
  0x1b   : > { %2593 = vmatprep.mubr.msk.bf16.mxu0 %vm572_vm0, %v2810_v5 }
  0x22   : > { %2594 = vmatmul.mubr.msk.bf16.gmra.mrb[8].mxu0 %vm572_vm0, %v2811_v6 }
  0x23   : > { %2597 = vmatprep.mubr.msk.bf16.mxu0 %vm572_vm0, %v2812_v7 }
  0x2a   : > { %2598 = vmatmul.mubr.msk.bf16.gmra.mrb[12].mxu0 %vm572_vm0, %v2813_v8 }
  0x2b   : > { %2601 = vmatprep.mubr.msk.bf16.mxu0 %vm572_vm0, %v2814_v9 }
  0x32   : > { %2602 = vmatmul.mubr.msk.bf16.gmra.mrb[16].mxu0 %vm572_vm0, %v2815_v10 }
  0x33   : > { %2605 = vmatprep.mubr.msk.bf16.mxu0 %vm572_vm0, %v2816_v11 }
  0x3a   : > { %2606 = vmatmul.mubr.msk.bf16.gmra.mrb[20].mxu0 %vm572_vm0, %v2817_v12 }
  0x3b   : > { %2609 = vmatprep.mubr.msk.bf16.mxu0 %vm572_vm0, %v2818_v13 }
  0x42   : > { %2610 = vmatmul.mubr.msk.bf16.gmra.mrb[24].mxu0 %vm572_vm0, %v2819_v14 }
  0x43   : > { %2613 = vmatprep.mubr.msk.bf16.mxu0 %vm572_vm0, %v2820_v15 }
  0x4a   : > { %2614 = vmatmul.mubr.msk.bf16.gmra.mrb[28].mxu0 %vm572_vm0, %v2821_v16 }
  0xe5   : > { %v2587_v22 = vpop.f32.mrb[0].mxu0 }
  0xe6   : > { %v655_v23 = vpop.f32.mrb[1].mxu0  ;;  %v2982_v26 = vadd.f32 %v2587_v22, %v2976_v21 }
  0xe7   : > { %v2979_v24 = vadd.f32 %v2976_v21, %v655_v23  ;;  %v2588_v25 = vpop.f32.mrb[2].mxu0 }
  0xe8   : > { %v2985_v27 = vadd.f32 %v2588_v25, %v2976_v21  ;;  %v658_v28 = vpop.f32.mrb[3].mxu0  ;;  %v784_v33 = vmax.f32 %v2982_v26, 0.0 }
  0xe9   : > { %v2988_v29 = vadd.f32 %v2976_v21, %v658_v28  ;;  %v782_v31 = vmax.f32 %v2979_v24, 0.0 }
  0xea   : > { %v785_v30 = vmax.f32 %v2985_v27, 0.0 }
  0xeb   : > { %v783_v32 = vmax.f32 %v2988_v29, 0.0 }
  0xec   : > { %v815_v36 = vpack.c.bf16 %v785_v30, %v784_v33 }
  0xed   : > { %v2591_v34 = vpop.f32.mrb[4].mxu0  ;;  %v814_v35 = vpack.c.bf16 %v783_v32, %v782_v31 }
  0xee   : > { %v671_v37 = vpop.f32.mrb[5].mxu0  ;;  %v3007_v40 = vadd.f32 %v2591_v34, %v2976_v21 }
  0xef   : > { %v3003_v38 = vadd.f32 %v2976_v21, %v671_v37  ;;  %v2592_v39 = vpop.f32.mrb[6].mxu0  ;;  %2621 = vmatprep.mubr.msk.bf16.mxu1 %vm853_vm1, %v814_v35 }
  0xf0   : > { %v3010_v41 = vadd.f32 %v2592_v39, %v2976_v21  ;;  %v674_v42 = vpop.f32.mrb[7].mxu0  ;;  %2622 = vmatmul.mubr.msk.bf16.vlgmr.msra.gmra.mrb[0].mxu1 %vm853_vm1, %v815_v36  ;;  %v788_v47 = vmax.f32 %v3007_v40, 0.0 }
  0xf1   : > { %v3014_v43 = vadd.f32 %v2976_v21, %v674_v42  ;;  %v786_v45 = vmax.f32 %v3003_v38, 0.0 }
  0xf2   : > { %v789_v44 = vmax.f32 %v3010_v41, 0.0 }
  0xf3   : > { %v787_v46 = vmax.f32 %v3014_v43, 0.0 }
  0xf4   : > { %v817_v50 = vpack.c.bf16 %v789_v44, %v788_v47 }
  0xf5   : > { %v816_v48 = vpack.c.bf16 %v787_v46, %v786_v45  ;;  %v2595_v49 = vpop.f32.mrb[8].mxu0 }
  0xf6   : > { %v687_v51 = vpop.f32.mrb[9].mxu0  ;;  %v3033_v54 = vadd.f32 %v2595_v49, %v2976_v21 }
  0xf7   : > { %v3029_v52 = vadd.f32 %v2976_v21, %v687_v51  ;;  %v2596_v53 = vpop.f32.mrb[10].mxu0  ;;  %2625 = vmatprep.mubr.msk.bf16.mxu1 %vm853_vm1, %v816_v48 }
  0xf8   : > { %v3036_v55 = vadd.f32 %v2596_v53, %v2976_v21  ;;  %v690_v56 = vpop.f32.mrb[11].mxu0  ;;  %2626 = vmatmul.mubr.msk.bf16.gmra.mrb[4].mxu1 %vm853_vm1, %v817_v50  ;;  %v792_v61 = vmax.f32 %v3033_v54, 0.0 }
  0xf9   : > { %v3040_v57 = vadd.f32 %v2976_v21, %v690_v56  ;;  %v790_v59 = vmax.f32 %v3029_v52, 0.0 }
  0xfa   : > { %v793_v58 = vmax.f32 %v3036_v55, 0.0 }
  0xfb   : > { %v791_v60 = vmax.f32 %v3040_v57, 0.0 }
  0xfc   : > { %v819_v0 = vpack.c.bf16 %v793_v58, %v792_v61 }
  0xfd   : > { %v818_v62 = vpack.c.bf16 %v791_v60, %v790_v59  ;;  %v2599_v63 = vpop.f32.mrb[12].mxu0 }
  0xfe   : > { %v703_v1 = vpop.f32.mrb[13].mxu0  ;;  %v3059_v4 = vadd.f32 %v2599_v63, %v2976_v21 }
  0xff   : > { %v3055_v2 = vadd.f32 %v2976_v21, %v703_v1  ;;  %v2600_v3 = vpop.f32.mrb[14].mxu0  ;;  %2629 = vmatprep.mubr.msk.bf16.mxu1 %vm853_vm1, %v818_v62 }
 0x100   : > { %v3062_v5 = vadd.f32 %v2600_v3, %v2976_v21  ;;  %v706_v6 = vpop.f32.mrb[15].mxu0  ;;  %2630 = vmatmul.mubr.msk.bf16.gmra.mrb[8].mxu1 %vm853_vm1, %v819_v0  ;;  %v3846_v11 = vmax.f32 %v3059_v4, 0.0 }
 0x101   : > { %v3066_v7 = vadd.f32 %v2976_v21, %v706_v6  ;;  %v794_v9 = vmax.f32 %v3055_v2, 0.0 }
 0x102   : > { %v3845_v8 = vmax.f32 %v3062_v5, 0.0 }
 0x103   : > { %v3844_v10 = vmax.f32 %v3066_v7, 0.0 }
 0x104   : > { %v821_v14 = vpack.c.bf16 %v3845_v8, %v3846_v11 }
 0x105   : > { %v820_v12 = vpack.c.bf16 %v3844_v10, %v794_v9  ;;  %v2603_v13 = vpop.f32.mrb[16].mxu0 }
 0x106   : > { %v719_v15 = vpop.f32.mrb[17].mxu0  ;;  %v3085_v18 = vadd.f32 %v2603_v13, %v2976_v21 }
 0x107   : > { %v3081_v16 = vadd.f32 %v2976_v21, %v719_v15  ;;  %v2604_v17 = vpop.f32.mrb[18].mxu0  ;;  %2633 = vmatprep.mubr.msk.bf16.mxu1 %vm853_vm1, %v820_v12 }
 0x108   : > { %v3088_v19 = vadd.f32 %v2604_v17, %v2976_v21  ;;  %v722_v20 = vpop.f32.mrb[19].mxu0  ;;  %2634 = vmatmul.mubr.msk.bf16.gmra.mrb[12].mxu1 %vm853_vm1, %v821_v14  ;;  %v3842_v34 = vmax.f32 %v3085_v18, 0.0 }
 0x109   : > { %v3092_v22 = vadd.f32 %v2976_v21, %v722_v20  ;;  %v3843_v25 = vmax.f32 %v3081_v16, 0.0 }
 0x10a   : > { %v3841_v23 = vmax.f32 %v3088_v19, 0.0 }
 0x10b   : > { %v3840_v28 = vmax.f32 %v3092_v22, 0.0 }
 0x10c   : > { %v823_v37 = vpack.c.bf16 %v3841_v23, %v3842_v34 }
 0x10d   : > { %v822_v35 = vpack.c.bf16 %v3840_v28, %v3843_v25  ;;  %v2607_v36 = vpop.f32.mrb[20].mxu0 }
 0x10e   : > { %v735_v39 = vpop.f32.mrb[21].mxu0  ;;  %v3111_v49 = vadd.f32 %v2607_v36, %v2976_v21 }
 0x10f   : > { %v3107_v42 = vadd.f32 %v2976_v21, %v735_v39  ;;  %v2608_v48 = vpop.f32.mrb[22].mxu0  ;;  %2637 = vmatprep.mubr.msk.bf16.mxu1 %vm853_vm1, %v822_v35 }
 0x110   : > { %v3114_v50 = vadd.f32 %v2608_v48, %v2976_v21  ;;  %v738_v51 = vpop.f32.mrb[23].mxu0  ;;  %2638 = vmatmul.mubr.msk.bf16.gmra.mrb[16].mxu1 %vm853_vm1, %v823_v37  ;;  %v3838_v0 = vmax.f32 %v3111_v49, 0.0 }
 0x111   : > { %v3118_v53 = vadd.f32 %v2976_v21, %v738_v51  ;;  %v3839_v62 = vmax.f32 %v3107_v42, 0.0 }
 0x112   : > { %v3837_v56 = vmax.f32 %v3114_v50, 0.0 }
 0x113   : > { %v3828_v63 = vmax.f32 %v3118_v53, 0.0 }
 0x114   : > { %v825_v6 = vpack.c.bf16 %v3837_v56, %v3838_v0 }
 0x115   : > { %v824_v1 = vpack.c.bf16 %v3828_v63, %v3839_v62  ;;  %v2611_v3 = vpop.f32.mrb[24].mxu0 }
 0x116   : > { %v751_v12 = vpop.f32.mrb[25].mxu0  ;;  %v3137_v15 = vadd.f32 %v2611_v3, %v2976_v21 }
 0x117   : > { %v3133_v13 = vadd.f32 %v2976_v21, %v751_v12  ;;  %v2612_v14 = vpop.f32.mrb[26].mxu0  ;;  %2641 = vmatprep.mubr.msk.bf16.mxu1 %vm853_vm1, %v824_v1 }
 0x118   : > { %v3140_v17 = vadd.f32 %v2612_v14, %v2976_v21  ;;  %v754_v20 = vpop.f32.mrb[27].mxu0  ;;  %2642 = vmatmul.mubr.msk.bf16.gmra.mrb[20].mxu1 %vm853_vm1, %v825_v6  ;;  %v3832_v48 = vmax.f32 %v3137_v15, 0.0 }
 0x119   : > { %v3144_v35 = vadd.f32 %v2976_v21, %v754_v20  ;;  %v3830_v37 = vmax.f32 %v3133_v13, 0.0 }
 0x11a   : > { %v3831_v36 = vmax.f32 %v3140_v17, 0.0 }
 0x11b   : > { %v3829_v39 = vmax.f32 %v3144_v35, 0.0 }
 0x11c   : > { %v827_v3 = vpack.c.bf16 %v3831_v36, %v3832_v48 }
 0x11d   : > { %v826_v51 = vpack.c.bf16 %v3829_v39, %v3830_v37  ;;  %v2615_v1 = vpop.f32.mrb[28].mxu0 }
 0x11e   : > { %v767_v6 = vpop.f32.mrb[29].mxu0  ;;  %v3163_v20 = vadd.f32 %v2615_v1, %v2976_v21 }
 0x11f   : > { %v3159_v12 = vadd.f32 %v2976_v21, %v767_v6  ;;  %v2616_v14 = vpop.f32.mrb[30].mxu0  ;;  %2645 = vmatprep.mubr.msk.bf16.mxu1 %vm853_vm1, %v826_v51 }
 0x120   : > { %v3166_v63 = vadd.f32 %v2616_v14, %v2976_v21  ;;  %v770_v39 = vpop.f32.mrb[31].mxu0  ;;  %2646 = vmatmul.mubr.msk.bf16.gmra.mrb[24].mxu1 %vm853_vm1, %v827_v3  ;;  %v3835_v51 = vmax.f32 %v3163_v20, 0.0  ;;  %v3195_v14 = vld [vmem:[%s3818_s4] ss:$0 sm:$0xff] }
 0x121   : > { %v3170_v37 = vadd.f32 %v2976_v21, %v770_v39  ;;  %v3836_v6 = vmax.f32 %v3159_v12, 0.0  ;;  %v2826_v21 = vld [vmem:[%s3821_s7] sm:$0xff]   ;;  %v2827_v39 = vld [vmem:[%s3821_s7 + $0x8] sm:$0xff]  }
 0x122   : > { %v3834_v36 = vmax.f32 %v3166_v63, 0.0  ;;  %2689 = vmatprep.subr.bf16.mxu1 %v2826_v21 }
 0x123   : > { %v3833_v48 = vmax.f32 %v3170_v37, 0.0  ;;  %2690 = vmatpush3.bf16.msra.mxu1 %v2826_v21 }
 0x124   : > { %v829_v3 = vpack.c.bf16 %v3834_v36, %v3835_v51  ;;  %2691 = vmatprep.subr.bf16.mxu1 %v2827_v39 }
 0x125   : > { %v828_v1 = vpack.c.bf16 %v3833_v48, %v3836_v6 }
 0x127   : > { %2649 = vmatprep.mubr.msk.bf16.mxu1 %vm853_vm1, %v828_v1  ;;  %2692 = vmatpush3.bf16.msra.mxu1 %v2827_v39 }
 0x128   : > { %2650 = vmatmul.mubr.msk.bf16.gmra.mrb[28].mxu1 %vm853_vm1, %v829_v3 }
 0x1c3   : > { %v2623_v1 = vpop.f32.mrb[0].mxu1 }
 0x1c4   : > { %v945_v3 = vadd.f32 %v2623_v1, %v3195_v14  ;;  %v936_v48 = vpop.f32.mrb[1].mxu1 }
 0x1c5   : > { %v937_v36 = vadd.f32 %v3195_v14, %v936_v48  ;;  %v2624_v51 = vpop.f32.mrb[2].mxu1 }
 0x1c6   : > { %v948_v6 = vadd.f32 %v2624_v51, %v3195_v14  ;;  %v939_v56 = vpop.f32.mrb[3].mxu1  ;;  %v1065_v21 = vmax.f32 %v945_v3, 0.0 }
 0x1c7   : > { %v940_v0 = vadd.f32 %v3195_v14, %v939_v56  ;;  %v1063_v39 = vmax.f32 %v937_v36, 0.0 }
 0x1c8   : > { %v1066_v62 = vmax.f32 %v948_v6, 0.0 }
 0x1c9   : > { %v1064_v28 = vmax.f32 %v940_v0, 0.0 }
 0x1ca   : > { %v1096_v23 = vpack.c.bf16 %v1066_v62, %v1065_v21 }
 0x1cb   : > { %v1095_v34 = vpack.c.bf16 %v1064_v28, %v1063_v39  ;;  %v2627_v25 = vpop.f32.mrb[4].mxu1 }
 0x1cc   : > { %v961_v10 = vadd.f32 %v2627_v25, %v3195_v14  ;;  %v952_v8 = vpop.f32.mrb[5].mxu1 }
 0x1cd   : > { %v953_v1 = vadd.f32 %v3195_v14, %v952_v8  ;;  %v2628_v11 = vpop.f32.mrb[6].mxu1  ;;  %2657 = vmatprep.mubr.msk.bf16.mxu0 %vm853_vm1, %v1095_v34 }
 0x1ce   : > { %v964_v48 = vadd.f32 %v2628_v11, %v3195_v14  ;;  %v955_v51 = vpop.f32.mrb[7].mxu1  ;;  %2658 = vmatmul.mubr.msk.bf16.vlgmr.msra.gmra.mrb[32].mxu0 %vm853_vm1, %v1096_v23  ;;  %v1069_v36 = vmax.f32 %v961_v10, 0.0 }
 0x1cf   : > { %v956_v56 = vadd.f32 %v3195_v14, %v955_v51  ;;  %v1067_v62 = vmax.f32 %v953_v1, 0.0 }
 0x1d0   : > { %v1070_v0 = vmax.f32 %v964_v48, 0.0 }
 0x1d1   : > { %v1068_v28 = vmax.f32 %v956_v56, 0.0 }
 0x1d2   : > { %v1098_v6 = vpack.c.bf16 %v1070_v0, %v1069_v36 }
 0x1d3   : > { %v1097_v3 = vpack.c.bf16 %v1068_v28, %v1067_v62  ;;  %v2631_v25 = vpop.f32.mrb[8].mxu1 }
 0x1d4   : > { %v977_v21 = vadd.f32 %v2631_v25, %v3195_v14  ;;  %v968_v8 = vpop.f32.mrb[9].mxu1 }
 0x1d5   : > { %v969_v39 = vadd.f32 %v3195_v14, %v968_v8  ;;  %v2632_v34 = vpop.f32.mrb[10].mxu1  ;;  %2661 = vmatprep.mubr.msk.bf16.mxu0 %vm853_vm1, %v1097_v3 }
 0x1d6   : > { %v980_v11 = vadd.f32 %v2632_v34, %v3195_v14  ;;  %v971_v23 = vpop.f32.mrb[11].mxu1  ;;  %2662 = vmatmul.mubr.msk.bf16.gmra.mrb[36].mxu0 %vm853_vm1, %v1098_v6  ;;  %v1073_v1 = vmax.f32 %v977_v21, 0.0 }
 0x1d7   : > { %v972_v10 = vadd.f32 %v3195_v14, %v971_v23  ;;  %v1071_v51 = vmax.f32 %v969_v39, 0.0 }
 0x1d8   : > { %v1074_v48 = vmax.f32 %v980_v11, 0.0 }
 0x1d9   : > { %v1072_v56 = vmax.f32 %v972_v10, 0.0 }
 0x1da   : > { %v1100_v36 = vpack.c.bf16 %v1074_v48, %v1073_v1 }
 0x1db   : > { %v1099_v0 = vpack.c.bf16 %v1072_v56, %v1071_v51  ;;  %v2635_v62 = vpop.f32.mrb[12].mxu1 }
 0x1dc   : > { %v993_v28 = vadd.f32 %v2635_v62, %v3195_v14  ;;  %v984_v25 = vpop.f32.mrb[13].mxu1 }
 0x1dd   : > { %v985_v8 = vadd.f32 %v3195_v14, %v984_v25  ;;  %v2636_v3 = vpop.f32.mrb[14].mxu1  ;;  %2665 = vmatprep.mubr.msk.bf16.mxu0 %vm853_vm1, %v1099_v0 }
 0x1de   : > { %v996_v34 = vadd.f32 %v2636_v3, %v3195_v14  ;;  %v987_v6 = vpop.f32.mrb[15].mxu1  ;;  %2666 = vmatmul.mubr.msk.bf16.gmra.mrb[40].mxu0 %vm853_vm1, %v1100_v36  ;;  %v1077_v39 = vmax.f32 %v993_v28, 0.0 }
 0x1df   : > { %v988_v21 = vadd.f32 %v3195_v14, %v987_v6  ;;  %v1075_v23 = vmax.f32 %v985_v8, 0.0 }
 0x1e0   : > { %v1078_v11 = vmax.f32 %v996_v34, 0.0 }
 0x1e1   : > { %v1076_v10 = vmax.f32 %v988_v21, 0.0 }
 0x1e2   : > { %v1102_v1 = vpack.c.bf16 %v1078_v11, %v1077_v39 }
 0x1e3   : > { %v1101_v48 = vpack.c.bf16 %v1076_v10, %v1075_v23  ;;  %v2639_v51 = vpop.f32.mrb[16].mxu1 }
 0x1e4   : > { %v1009_v56 = vadd.f32 %v2639_v51, %v3195_v14  ;;  %v1000_v62 = vpop.f32.mrb[17].mxu1 }
 0x1e5   : > { %v1001_v25 = vadd.f32 %v3195_v14, %v1000_v62  ;;  %v2640_v0 = vpop.f32.mrb[18].mxu1  ;;  %2669 = vmatprep.mubr.msk.bf16.mxu0 %vm853_vm1, %v1101_v48 }
 0x1e6   : > { %v1012_v3 = vadd.f32 %v2640_v0, %v3195_v14  ;;  %v1003_v36 = vpop.f32.mrb[19].mxu1  ;;  %2670 = vmatmul.mubr.msk.bf16.gmra.mrb[44].mxu0 %vm853_vm1, %v1102_v1  ;;  %v1081_v8 = vmax.f32 %v1009_v56, 0.0 }
 0x1e7   : > { %v1004_v28 = vadd.f32 %v3195_v14, %v1003_v36  ;;  %v1079_v6 = vmax.f32 %v1001_v25, 0.0 }
 0x1e8   : > { %v1082_v34 = vmax.f32 %v1012_v3, 0.0 }
 0x1e9   : > { %v1080_v21 = vmax.f32 %v1004_v28, 0.0 }
 0x1ea   : > { %v1104_v39 = vpack.c.bf16 %v1082_v34, %v1081_v8 }
 0x1eb   : > { %v1103_v11 = vpack.c.bf16 %v1080_v21, %v1079_v6  ;;  %v2643_v23 = vpop.f32.mrb[20].mxu1 }
 0x1ec   : > { %v1025_v10 = vadd.f32 %v2643_v23, %v3195_v14  ;;  %v1016_v51 = vpop.f32.mrb[21].mxu1 }
 0x1ed   : > { %v1017_v62 = vadd.f32 %v3195_v14, %v1016_v51  ;;  %v2644_v48 = vpop.f32.mrb[22].mxu1  ;;  %2673 = vmatprep.mubr.msk.bf16.mxu0 %vm853_vm1, %v1103_v11 }
 0x1ee   : > { %v1028_v0 = vadd.f32 %v2644_v48, %v3195_v14  ;;  %v1019_v1 = vpop.f32.mrb[23].mxu1  ;;  %2674 = vmatmul.mubr.msk.bf16.gmra.mrb[48].mxu0 %vm853_vm1, %v1104_v39  ;;  %v1085_v25 = vmax.f32 %v1025_v10, 0.0 }
 0x1ef   : > { %v1020_v56 = vadd.f32 %v3195_v14, %v1019_v1  ;;  %v1083_v36 = vmax.f32 %v1017_v62, 0.0 }
 0x1f0   : > { %v1086_v3 = vmax.f32 %v1028_v0, 0.0 }
 0x1f1   : > { %v1084_v28 = vmax.f32 %v1020_v56, 0.0 }
 0x1f2   : > { %v1106_v8 = vpack.c.bf16 %v1086_v3, %v1085_v25 }
 0x1f3   : > { %v1105_v34 = vpack.c.bf16 %v1084_v28, %v1083_v36  ;;  %v2647_v6 = vpop.f32.mrb[24].mxu1 }
 0x1f4   : > { %v1041_v21 = vadd.f32 %v2647_v6, %v3195_v14  ;;  %v1032_v23 = vpop.f32.mrb[25].mxu1 }
 0x1f5   : > { %v1033_v51 = vadd.f32 %v3195_v14, %v1032_v23  ;;  %v2648_v11 = vpop.f32.mrb[26].mxu1  ;;  %2677 = vmatprep.mubr.msk.bf16.mxu0 %vm853_vm1, %v1105_v34 }
 0x1f6   : > { %v1044_v48 = vadd.f32 %v2648_v11, %v3195_v14  ;;  %v1035_v39 = vpop.f32.mrb[27].mxu1  ;;  %2678 = vmatmul.mubr.msk.bf16.gmra.mrb[52].mxu0 %vm853_vm1, %v1106_v8  ;;  %v1089_v62 = vmax.f32 %v1041_v21, 0.0 }
 0x1f7   : > { %v1036_v10 = vadd.f32 %v3195_v14, %v1035_v39  ;;  %v1087_v1 = vmax.f32 %v1033_v51, 0.0 }
 0x1f8   : > { %v1090_v0 = vmax.f32 %v1044_v48, 0.0 }
 0x1f9   : > { %v1088_v56 = vmax.f32 %v1036_v10, 0.0 }
 0x1fa   : > { %v1108_v25 = vpack.c.bf16 %v1090_v0, %v1089_v62 }
 0x1fb   : > { %v1107_v3 = vpack.c.bf16 %v1088_v56, %v1087_v1  ;;  %v2651_v36 = vpop.f32.mrb[28].mxu1  ;;  %v2828_v1 = vld [vmem:[%s3823_s9] sm:$0xff]   ;;  %v2829_v56 = vld [vmem:[%s3823_s9 + $0x8] sm:$0xff]  }
 0x1fc   : > { %v1057_v28 = vadd.f32 %v2651_v36, %v3195_v14  ;;  %v1048_v6 = vpop.f32.mrb[29].mxu1  ;;  %2725 = vmatprep.subr.bf16.mxu0 %v2828_v1 }
 0x1fd   : > { %v1049_v23 = vadd.f32 %v3195_v14, %v1048_v6  ;;  %v2652_v34 = vpop.f32.mrb[30].mxu1  ;;  %2681 = vmatprep.mubr.msk.bf16.mxu0 %vm853_vm1, %v1107_v3  ;;  %2726 = vmatpush3.bf16.msra.mxu0 %v2828_v1 }
 0x1fe   : > { %v1060_v11 = vadd.f32 %v2652_v34, %v3195_v14  ;;  %v1051_v8 = vpop.f32.mrb[31].mxu1  ;;  %2682 = vmatmul.mubr.msk.bf16.gmra.mrb[56].mxu0 %vm853_vm1, %v1108_v25  ;;  %v1093_v51 = vmax.f32 %v1057_v28, 0.0  ;;  %2727 = vmatprep.subr.bf16.mxu0 %v2829_v56 }
 0x1ff   : > { %v1052_v21 = vadd.f32 %v3195_v14, %v1051_v8  ;;  %v1091_v39 = vmax.f32 %v1049_v23, 0.0  ;;  %v3254_v14 = vld [vmem:[%s3820_s6] ss:$0 sm:$0xff] }
 0x200   : > { %v1094_v48 = vmax.f32 %v1060_v11, 0.0 }
 0x201   : > { %v1092_v10 = vmax.f32 %v1052_v21, 0.0  ;;  %2728 = vmatpush3.bf16.msra.mxu0 %v2829_v56 }
 0x202   : > { %v1110_v62 = vpack.c.bf16 %v1094_v48, %v1093_v51 }
 0x203   : > { %v1109_v0 = vpack.c.bf16 %v1092_v10, %v1091_v39 }
 0x205   : > { %2685 = vmatprep.mubr.msk.bf16.mxu0 %vm853_vm1, %v1109_v0 }
 0x206   : > { %2686 = vmatmul.mubr.msk.bf16.gmra.mrb[60].mxu0 %vm853_vm1, %v1110_v62 }
 0x2a1   : > { %v2659_v25 = vpop.f32.mrb[32].mxu0 }
 0x2a2   : > { %v1225_v3 = vadd.f32 %v2659_v25, %v3254_v14  ;;  %v1216_v36 = vpop.f32.mrb[33].mxu0 }
 0x2a3   : > { %v1217_v28 = vadd.f32 %v3254_v14, %v1216_v36  ;;  %v2660_v6 = vpop.f32.mrb[34].mxu0 }
 0x2a4   : > { %v1228_v23 = vadd.f32 %v2660_v6, %v3254_v14  ;;  %v1219_v34 = vpop.f32.mrb[35].mxu0  ;;  %v3266_v21 = vadd.f32 %v1225_v3, %v784_v33 }
 0x2a5   : > { %v3261_v11 = vadd.f32 %v1217_v28, %v782_v31  ;;  %v1220_v8 = vadd.f32 %v3254_v14, %v1219_v34 }
 0x2a6   : > { %v3270_v51 = vadd.f32 %v1228_v23, %v785_v30  ;;  %v1377_v62 = vmax.f32 %v3266_v21, 0.0 }
 0x2a7   : > { %v3274_v48 = vadd.f32 %v1220_v8, %v783_v32  ;;  %v1375_v24 = vmax.f32 %v3261_v11, 0.0 }
 0x2a8   : > { %v1378_v39 = vmax.f32 %v3270_v51, 0.0 }
 0x2a9   : > { %v1376_v31 = vmax.f32 %v3274_v48, 0.0  ;;  %v2663_v10 = vpop.f32.mrb[36].mxu0 }
 0x2aa   : > { %v1241_v26 = vadd.f32 %v2663_v10, %v3254_v14  ;;  %v1232_v33 = vpop.f32.mrb[37].mxu0  ;;  %v1408_v32 = vpack.c.bf16 %v1378_v39, %v1377_v62 }
 0x2ab   : > { %v1407_v27 = vpack.c.bf16 %v1376_v31, %v1375_v24  ;;  %v1233_v29 = vadd.f32 %v3254_v14, %v1232_v33  ;;  %v2664_v30 = vpop.f32.mrb[38].mxu0 }
 0x2ac   : > { %v1244_v0 = vadd.f32 %v2664_v30, %v3254_v14  ;;  %v1235_v1 = vpop.f32.mrb[39].mxu0  ;;  %v3299_v3 = vadd.f32 %v1241_v26, %v788_v47 }
 0x2ad   : > { %v3293_v56 = vadd.f32 %v1233_v29, %v786_v45  ;;  %v1236_v25 = vadd.f32 %v3254_v14, %v1235_v1  ;;  %2693 = vmatprep.mubr.msk.bf16.mxu1 %vm853_vm1, %v1407_v27 }
 0x2ae   : > { %v3303_v36 = vadd.f32 %v1244_v0, %v789_v44  ;;  %2694 = vmatmul.mubr.msk.bf16.vlgmr.msra.gmra.mrb[32].mxu1 %vm853_vm1, %v1408_v32  ;;  %v1381_v40 = vmax.f32 %v3299_v3, 0.0 }
 0x2af   : > { %v3308_v28 = vadd.f32 %v1236_v25, %v787_v46  ;;  %v1379_v45 = vmax.f32 %v3293_v56, 0.0 }
 0x2b0   : > { %v1382_v38 = vmax.f32 %v3303_v36, 0.0 }
 0x2b1   : > { %v1380_v6 = vmax.f32 %v3308_v28, 0.0  ;;  %v2667_v23 = vpop.f32.mrb[40].mxu0 }
 0x2b2   : > { %v1257_v47 = vadd.f32 %v2667_v23, %v3254_v14  ;;  %v1248_v41 = vpop.f32.mrb[41].mxu0  ;;  %v1410_v34 = vpack.c.bf16 %v1382_v38, %v1381_v40 }
 0x2b3   : > { %v1409_v44 = vpack.c.bf16 %v1380_v6, %v1379_v45  ;;  %v1249_v43 = vadd.f32 %v3254_v14, %v1248_v41  ;;  %v2668_v46 = vpop.f32.mrb[42].mxu0 }
 0x2b4   : > { %v1260_v8 = vadd.f32 %v2668_v46, %v3254_v14  ;;  %v1251_v10 = vpop.f32.mrb[43].mxu0  ;;  %v3333_v27 = vadd.f32 %v1257_v47, %v792_v61  ;;  %v3867_v46 = vmax.f32 %v3062_v5, 0.0 }
 0x2b5   : > { %v3327_v26 = vadd.f32 %v1249_v43, %v790_v59  ;;  %v1252_v33 = vadd.f32 %v3254_v14, %v1251_v10  ;;  %2697 = vmatprep.mubr.msk.bf16.mxu1 %vm853_vm1, %v1409_v44  ;;  %v3866_v44 = vmax.f32 %v3059_v4, 0.0 }
 0x2b6   : > { %v3337_v29 = vadd.f32 %v1260_v8, %v793_v58  ;;  %2698 = vmatmul.mubr.msk.bf16.gmra.mrb[36].mxu1 %vm853_vm1, %v1410_v34  ;;  %v1385_v54 = vmax.f32 %v3333_v27, 0.0  ;;  %v3868_v8 = vmax.f32 %v3066_v7, 0.0 }
 0x2b7   : > { %v3342_v30 = vadd.f32 %v1252_v33, %v791_v60  ;;  %v1383_v59 = vmax.f32 %v3327_v26, 0.0 }
 0x2b8   : > { %v1386_v52 = vmax.f32 %v3337_v29, 0.0 }
 0x2b9   : > { %v1384_v32 = vmax.f32 %v3342_v30, 0.0  ;;  %v2671_v0 = vpop.f32.mrb[44].mxu0 }
 0x2ba   : > { %v1273_v61 = vadd.f32 %v2671_v0, %v3254_v14  ;;  %v1264_v55 = vpop.f32.mrb[45].mxu0  ;;  %v1412_v1 = vpack.c.bf16 %v1386_v52, %v1385_v54 }
 0x2bb   : > { %v1411_v58 = vpack.c.bf16 %v1384_v32, %v1383_v59  ;;  %v1265_v57 = vadd.f32 %v3254_v14, %v1264_v55  ;;  %v2672_v60 = vpop.f32.mrb[46].mxu0 }
 0x2bc   : > { %v1276_v25 = vadd.f32 %v2672_v60, %v3254_v14  ;;  %v1267_v23 = vpop.f32.mrb[47].mxu0  ;;  %v3367_v43 = vadd.f32 %v1273_v61, %v3866_v44  ;;  %v3870_v44 = vmax.f32 %v3085_v18, 0.0 }
 0x2bd   : > { %v3361_v47 = vadd.f32 %v1265_v57, %v794_v9  ;;  %v1268_v41 = vadd.f32 %v3254_v14, %v1267_v23  ;;  %2701 = vmatprep.mubr.msk.bf16.mxu1 %vm853_vm1, %v1411_v58 }
 0x2be   : > { %v3371_v34 = vadd.f32 %v1276_v25, %v3867_v46  ;;  %2702 = vmatmul.mubr.msk.bf16.gmra.mrb[40].mxu1 %vm853_vm1, %v1412_v1  ;;  %v1389_v4 = vmax.f32 %v3367_v43, 0.0  ;;  %v3869_v25 = vmax.f32 %v3081_v16, 0.0 }
 0x2bf   : > { %v3376_v10 = vadd.f32 %v1268_v41, %v3868_v8  ;;  %v3865_v9 = vmax.f32 %v3361_v47, 0.0  ;;  %v3871_v8 = vmax.f32 %v3088_v19, 0.0 }
 0x2c0   : > { %v3864_v2 = vmax.f32 %v3371_v34, 0.0 }
 0x2c1   : > { %v3849_v33 = vmax.f32 %v3376_v10, 0.0  ;;  %v2675_v0 = vpop.f32.mrb[48].mxu0 }
 0x2c2   : > { %v1289_v61 = vadd.f32 %v2675_v0, %v3254_v14  ;;  %v1280_v5 = vpop.f32.mrb[49].mxu0  ;;  %v1414_v57 = vpack.c.bf16 %v3864_v2, %v1389_v4 }
 0x2c3   : > { %v1413_v55 = vpack.c.bf16 %v3849_v33, %v3865_v9  ;;  %v1281_v7 = vadd.f32 %v3254_v14, %v1280_v5  ;;  %v2676_v58 = vpop.f32.mrb[50].mxu0  ;;  %v3872_v5 = vmax.f32 %v3092_v22, 0.0 }
 0x2c4   : > { %v1292_v60 = vadd.f32 %v2676_v58, %v3254_v14  ;;  %v1283_v1 = vpop.f32.mrb[51].mxu0  ;;  %v3401_v46 = vadd.f32 %v1289_v61, %v3870_v44 }
 0x2c5   : > { %v3395_v23 = vadd.f32 %v1281_v7, %v3869_v25  ;;  %v1284_v41 = vadd.f32 %v3254_v14, %v1283_v1  ;;  %2705 = vmatprep.mubr.msk.bf16.mxu1 %vm853_vm1, %v1413_v55 }
 0x2c6   : > { %v3405_v0 = vadd.f32 %v1292_v60, %v3871_v8  ;;  %2706 = vmatmul.mubr.msk.bf16.gmra.mrb[44].mxu1 %vm853_vm1, %v1414_v57  ;;  %v3853_v18 = vmax.f32 %v3401_v46, 0.0  ;;  %v3873_v8 = vmax.f32 %v3107_v42, 0.0 }
 0x2c7   : > { %v3410_v58 = vadd.f32 %v1284_v41, %v3872_v5  ;;  %v3848_v7 = vmax.f32 %v3395_v23, 0.0 }
 0x2c8   : > { %v3850_v16 = vmax.f32 %v3405_v0, 0.0 }
 0x2c9   : > { %v3847_v55 = vmax.f32 %v3410_v58, 0.0  ;;  %v2679_v1 = vpop.f32.mrb[52].mxu0 }
 0x2ca   : > { %v1305_v61 = vadd.f32 %v2679_v1, %v3254_v14  ;;  %v1296_v19 = vpop.f32.mrb[53].mxu0  ;;  %v1416_v25 = vpack.c.bf16 %v3850_v16, %v3853_v18 }
 0x2cb   : > { %v1415_v57 = vpack.c.bf16 %v3847_v55, %v3848_v7  ;;  %v1297_v22 = vadd.f32 %v3254_v14, %v1296_v19  ;;  %v2680_v60 = vpop.f32.mrb[54].mxu0  ;;  %v3874_v55 = vmax.f32 %v3111_v49, 0.0  ;;  %v3875_v7 = vmax.f32 %v3114_v50, 0.0 }
 0x2cc   : > { %v1308_v41 = vadd.f32 %v2680_v60, %v3254_v14  ;;  %v1299_v44 = vpop.f32.mrb[55].mxu0  ;;  %v3876_v60 = vmax.f32 %v3118_v53, 0.0 }
 0x2cd   : > { %v3429_v5 = vadd.f32 %v1297_v22, %v3873_v8  ;;  %v1300_v1 = vadd.f32 %v3254_v14, %v1299_v44  ;;  %2709 = vmatprep.mubr.msk.bf16.mxu1 %vm853_vm1, %v1415_v57  ;;  %v3435_v19 = vadd.f32 %v1305_v61, %v3874_v55 }
 0x2ce   : > { %v3439_v33 = vadd.f32 %v1308_v41, %v3875_v7  ;;  %2710 = vmatmul.mubr.msk.bf16.gmra.mrb[48].mxu1 %vm853_vm1, %v1416_v25 }
 0x2cf   : > { %v3444_v16 = vadd.f32 %v1300_v1, %v3876_v60  ;;  %v3852_v22 = vmax.f32 %v3429_v5, 0.0  ;;  %v3857_v49 = vmax.f32 %v3435_v19, 0.0  ;;  %v3877_v1 = vmax.f32 %v3133_v13, 0.0 }
 0x2d0   : > { %v3854_v42 = vmax.f32 %v3439_v33, 0.0 }
 0x2d1   : > { %v3851_v57 = vmax.f32 %v3444_v16, 0.0  ;;  %v2683_v44 = vpop.f32.mrb[56].mxu0 }
 0x2d2   : > { %v1321_v55 = vadd.f32 %v2683_v44, %v3254_v14  ;;  %v1312_v50 = vpop.f32.mrb[57].mxu0  ;;  %v1418_v25 = vpack.c.bf16 %v3854_v42, %v3857_v49 }
 0x2d3   : > { %v1417_v7 = vpack.c.bf16 %v3851_v57, %v3852_v22  ;;  %v1313_v53 = vadd.f32 %v3254_v14, %v1312_v50  ;;  %v2684_v61 = vpop.f32.mrb[58].mxu0  ;;  %v3878_v57 = vmax.f32 %v3137_v15, 0.0  ;;  %v3879_v22 = vmax.f32 %v3140_v17, 0.0 }
 0x2d4   : > { %v1324_v41 = vadd.f32 %v2684_v61, %v3254_v14  ;;  %v1315_v8 = vpop.f32.mrb[59].mxu0  ;;  %v3880_v61 = vmax.f32 %v3144_v35, 0.0 }
 0x2d5   : > { %v3463_v60 = vadd.f32 %v1313_v53, %v3877_v1  ;;  %v1316_v44 = vadd.f32 %v3254_v14, %v1315_v8  ;;  %2713 = vmatprep.mubr.msk.bf16.mxu1 %vm853_vm1, %v1417_v7  ;;  %v3469_v50 = vadd.f32 %v1321_v55, %v3878_v57 }
 0x2d6   : > { %v3473_v18 = vadd.f32 %v1324_v41, %v3879_v22  ;;  %2714 = vmatmul.mubr.msk.bf16.gmra.mrb[52].mxu1 %vm853_vm1, %v1418_v25 }
 0x2d7   : > { %v3478_v42 = vadd.f32 %v1316_v44, %v3880_v61  ;;  %v3856_v53 = vmax.f32 %v3463_v60, 0.0  ;;  %v3863_v15 = vmax.f32 %v3469_v50, 0.0  ;;  %v3881_v44 = vmax.f32 %v3159_v12, 0.0 }
 0x2d8   : > { %v3858_v13 = vmax.f32 %v3473_v18, 0.0 }
 0x2d9   : > { %v3855_v7 = vmax.f32 %v3478_v42, 0.0  ;;  %v2687_v8 = vpop.f32.mrb[60].mxu0 }
 0x2da   : > { %v1337_v57 = vadd.f32 %v2687_v8, %v3254_v14  ;;  %v1328_v17 = vpop.f32.mrb[61].mxu0  ;;  %v1420_v25 = vpack.c.bf16 %v3858_v13, %v3863_v15 }
 0x2db   : > { %v1419_v22 = vpack.c.bf16 %v3855_v7, %v3856_v53  ;;  %v1329_v35 = vadd.f32 %v3254_v14, %v1328_v17  ;;  %v2688_v55 = vpop.f32.mrb[62].mxu0  ;;  %v3882_v7 = vmax.f32 %v3163_v20, 0.0  ;;  %v3883_v53 = vmax.f32 %v3166_v63, 0.0 }
 0x2dc   : > { %v1340_v41 = vadd.f32 %v2688_v55, %v3254_v14  ;;  %v1331_v1 = vpop.f32.mrb[63].mxu0  ;;  %v3884_v55 = vmax.f32 %v3170_v37, 0.0 }
 0x2dd   : > { %v3497_v61 = vadd.f32 %v1329_v35, %v3881_v44  ;;  %v1332_v8 = vadd.f32 %v3254_v14, %v1331_v1  ;;  %2717 = vmatprep.mubr.msk.bf16.mxu1 %vm853_vm1, %v1419_v22  ;;  %v3503_v17 = vadd.f32 %v1337_v57, %v3882_v7  ;;  %v2831_v7 = vld [vmem:[%s3825_s11 + $0x8] sm:$0xff]   ;;  %v3537_v57 = vld [vmem:[%s3822_s8] ss:$0 sm:$0xff] }
 0x2de   : > { %v3507_v49 = vadd.f32 %v1340_v41, %v3883_v53  ;;  %2718 = vmatmul.mubr.msk.bf16.gmra.mrb[56].mxu1 %vm853_vm1, %v1420_v25  ;;  %v2830_v53 = vld [vmem:[%s3825_s11] sm:$0xff]  }
 0x2df   : > { %v3512_v13 = vadd.f32 %v1332_v8, %v3884_v55  ;;  %v3861_v14 = vmax.f32 %v3497_v61, 0.0  ;;  %v3862_v20 = vmax.f32 %v3503_v17, 0.0  ;;  %2761 = vmatprep.subr.bf16.mxu1 %v2830_v53 }
 0x2e0   : > { %v3860_v12 = vmax.f32 %v3507_v49, 0.0  ;;  %2762 = vmatpush3.bf16.msra.mxu1 %v2830_v53 }
 0x2e1   : > { %v3859_v22 = vmax.f32 %v3512_v13, 0.0  ;;  %2763 = vmatprep.subr.bf16.mxu1 %v2831_v7 }
 0x2e2   : > { %v1422_v37 = vpack.c.bf16 %v3860_v12, %v3862_v20 }
 0x2e3   : > { %v1421_v63 = vpack.c.bf16 %v3859_v22, %v3861_v14 }
 0x2e4   : > { %2764 = vmatpush3.bf16.msra.mxu1 %v2831_v7 }
 0x2e5   : > { %2721 = vmatprep.mubr.msk.bf16.mxu1 %vm853_vm1, %v1421_v63 }
 0x2e6   : > { %2722 = vmatmul.mubr.msk.bf16.gmra.mrb[60].mxu1 %vm853_vm1, %v1422_v37 }
 0x381   : > { %v2695_v35 = vpop.f32.mrb[32].mxu1 }
 0x382   : > { %v1537_v25 = vadd.f32 %v2695_v35, %v3537_v57  ;;  %v1528_v41 = vpop.f32.mrb[33].mxu1 }
 0x383   : > { %v1529_v1 = vadd.f32 %v3537_v57, %v1528_v41  ;;  %v2696_v44 = vpop.f32.mrb[34].mxu1 }
 0x384   : > { %v1540_v8 = vadd.f32 %v2696_v44, %v3537_v57  ;;  %v1531_v55 = vpop.f32.mrb[35].mxu1  ;;  %v1657_v37 = vmax.f32 %v1537_v25, 0.0 }
 0x385   : > { %v1532_v63 = vadd.f32 %v3537_v57, %v1531_v55  ;;  %v1655_v7 = vmax.f32 %v1529_v1, 0.0 }
 0x386   : > { %v1658_v53 = vmax.f32 %v1540_v8, 0.0 }
 0x387   : > { %v1656_v22 = vmax.f32 %v1532_v63, 0.0 }
 0x388   : > { %v1688_v12 = vpack.c.bf16 %v1658_v53, %v1657_v37 }
 0x389   : > { %v1687_v14 = vpack.c.bf16 %v1656_v22, %v1655_v7  ;;  %v2699_v20 = vpop.f32.mrb[36].mxu1 }
 0x38a   : > { %v1553_v15 = vadd.f32 %v2699_v20, %v3537_v57  ;;  %v1544_v2 = vpop.f32.mrb[37].mxu1 }
 0x38b   : > { %v1545_v35 = vadd.f32 %v3537_v57, %v1544_v2  ;;  %v2700_v9 = vpop.f32.mrb[38].mxu1  ;;  %2729 = vmatprep.mubr.msk.bf16.mxu0 %vm853_vm1, %v1687_v14 }
 0x38c   : > { %v1556_v41 = vadd.f32 %v2700_v9, %v3537_v57  ;;  %v1547_v44 = vpop.f32.mrb[39].mxu1  ;;  %2730 = vmatmul.mubr.msk.bf16.vlgmr.msra.gmra.mrb[64].mxu0 %vm853_vm1, %v1688_v12  ;;  %v1661_v1 = vmax.f32 %v1553_v15, 0.0 }
 0x38d   : > { %v1548_v25 = vadd.f32 %v3537_v57, %v1547_v44  ;;  %v1659_v55 = vmax.f32 %v1545_v35, 0.0 }
 0x38e   : > { %v1662_v8 = vmax.f32 %v1556_v41, 0.0 }
 0x38f   : > { %v1660_v22 = vmax.f32 %v1548_v25, 0.0 }
 0x390   : > { %v1690_v63 = vpack.c.bf16 %v1662_v8, %v1661_v1 }
 0x391   : > { %v1689_v37 = vpack.c.bf16 %v1660_v22, %v1659_v55  ;;  %v2703_v20 = vpop.f32.mrb[40].mxu1 }
 0x392   : > { %v1569_v53 = vadd.f32 %v2703_v20, %v3537_v57  ;;  %v1560_v2 = vpop.f32.mrb[41].mxu1 }
 0x393   : > { %v1561_v7 = vadd.f32 %v3537_v57, %v1560_v2  ;;  %v2704_v14 = vpop.f32.mrb[42].mxu1  ;;  %2733 = vmatprep.mubr.msk.bf16.mxu0 %vm853_vm1, %v1689_v37 }
 0x394   : > { %v1572_v9 = vadd.f32 %v2704_v14, %v3537_v57  ;;  %v1563_v12 = vpop.f32.mrb[43].mxu1  ;;  %2734 = vmatmul.mubr.msk.bf16.gmra.mrb[68].mxu0 %vm853_vm1, %v1690_v63  ;;  %v1665_v35 = vmax.f32 %v1569_v53, 0.0 }
 0x395   : > { %v1564_v15 = vadd.f32 %v3537_v57, %v1563_v12  ;;  %v1663_v44 = vmax.f32 %v1561_v7, 0.0 }
 0x396   : > { %v1666_v41 = vmax.f32 %v1572_v9, 0.0 }
 0x397   : > { %v1664_v25 = vmax.f32 %v1564_v15, 0.0 }
 0x398   : > { %v1692_v1 = vpack.c.bf16 %v1666_v41, %v1665_v35 }
 0x399   : > { %v1691_v8 = vpack.c.bf16 %v1664_v25, %v1663_v44  ;;  %v2707_v55 = vpop.f32.mrb[44].mxu1 }
 0x39a   : > { %v1585_v22 = vadd.f32 %v2707_v55, %v3537_v57  ;;  %v1576_v20 = vpop.f32.mrb[45].mxu1 }
 0x39b   : > { %v1577_v2 = vadd.f32 %v3537_v57, %v1576_v20  ;;  %v2708_v37 = vpop.f32.mrb[46].mxu1  ;;  %2737 = vmatprep.mubr.msk.bf16.mxu0 %vm853_vm1, %v1691_v8 }
 0x39c   : > { %v1588_v14 = vadd.f32 %v2708_v37, %v3537_v57  ;;  %v1579_v63 = vpop.f32.mrb[47].mxu1  ;;  %2738 = vmatmul.mubr.msk.bf16.gmra.mrb[72].mxu0 %vm853_vm1, %v1692_v1  ;;  %v1669_v7 = vmax.f32 %v1585_v22, 0.0 }
 0x39d   : > { %v1580_v53 = vadd.f32 %v3537_v57, %v1579_v63  ;;  %v1667_v12 = vmax.f32 %v1577_v2, 0.0 }
 0x39e   : > { %v1670_v9 = vmax.f32 %v1588_v14, 0.0 }
 0x39f   : > { %v1668_v15 = vmax.f32 %v1580_v53, 0.0 }
 0x3a0   : > { %v1694_v35 = vpack.c.bf16 %v1670_v9, %v1669_v7 }
 0x3a1   : > { %v1693_v41 = vpack.c.bf16 %v1668_v15, %v1667_v12  ;;  %v2711_v44 = vpop.f32.mrb[48].mxu1 }
 0x3a2   : > { %v1601_v25 = vadd.f32 %v2711_v44, %v3537_v57  ;;  %v1592_v55 = vpop.f32.mrb[49].mxu1 }
 0x3a3   : > { %v1593_v20 = vadd.f32 %v3537_v57, %v1592_v55  ;;  %v2712_v8 = vpop.f32.mrb[50].mxu1  ;;  %2741 = vmatprep.mubr.msk.bf16.mxu0 %vm853_vm1, %v1693_v41 }
 0x3a4   : > { %v1604_v37 = vadd.f32 %v2712_v8, %v3537_v57  ;;  %v1595_v1 = vpop.f32.mrb[51].mxu1  ;;  %2742 = vmatmul.mubr.msk.bf16.gmra.mrb[76].mxu0 %vm853_vm1, %v1694_v35  ;;  %v1673_v2 = vmax.f32 %v1601_v25, 0.0 }
 0x3a5   : > { %v1596_v22 = vadd.f32 %v3537_v57, %v1595_v1  ;;  %v1671_v63 = vmax.f32 %v1593_v20, 0.0 }
 0x3a6   : > { %v1674_v14 = vmax.f32 %v1604_v37, 0.0 }
 0x3a7   : > { %v1672_v53 = vmax.f32 %v1596_v22, 0.0 }
 0x3a8   : > { %v1696_v7 = vpack.c.bf16 %v1674_v14, %v1673_v2 }
 0x3a9   : > { %v1695_v9 = vpack.c.bf16 %v1672_v53, %v1671_v63  ;;  %v2715_v12 = vpop.f32.mrb[52].mxu1 }
 0x3aa   : > { %v1617_v15 = vadd.f32 %v2715_v12, %v3537_v57  ;;  %v1608_v44 = vpop.f32.mrb[53].mxu1 }
 0x3ab   : > { %v1609_v55 = vadd.f32 %v3537_v57, %v1608_v44  ;;  %v2716_v41 = vpop.f32.mrb[54].mxu1  ;;  %2745 = vmatprep.mubr.msk.bf16.mxu0 %vm853_vm1, %v1695_v9 }
 0x3ac   : > { %v1620_v8 = vadd.f32 %v2716_v41, %v3537_v57  ;;  %v1611_v35 = vpop.f32.mrb[55].mxu1  ;;  %2746 = vmatmul.mubr.msk.bf16.gmra.mrb[80].mxu0 %vm853_vm1, %v1696_v7  ;;  %v1677_v20 = vmax.f32 %v1617_v15, 0.0 }
 0x3ad   : > { %v1612_v25 = vadd.f32 %v3537_v57, %v1611_v35  ;;  %v1675_v1 = vmax.f32 %v1609_v55, 0.0 }
 0x3ae   : > { %v1678_v37 = vmax.f32 %v1620_v8, 0.0 }
 0x3af   : > { %v1676_v22 = vmax.f32 %v1612_v25, 0.0 }
 0x3b0   : > { %v1698_v2 = vpack.c.bf16 %v1678_v37, %v1677_v20 }
 0x3b1   : > { %v1697_v14 = vpack.c.bf16 %v1676_v22, %v1675_v1  ;;  %v2719_v63 = vpop.f32.mrb[56].mxu1 }
 0x3b2   : > { %v1633_v53 = vadd.f32 %v2719_v63, %v3537_v57  ;;  %v1624_v12 = vpop.f32.mrb[57].mxu1 }
 0x3b3   : > { %v1625_v44 = vadd.f32 %v3537_v57, %v1624_v12  ;;  %v2720_v9 = vpop.f32.mrb[58].mxu1  ;;  %2749 = vmatprep.mubr.msk.bf16.mxu0 %vm853_vm1, %v1697_v14 }
 0x3b4   : > { %v1636_v41 = vadd.f32 %v2720_v9, %v3537_v57  ;;  %v1627_v7 = vpop.f32.mrb[59].mxu1  ;;  %2750 = vmatmul.mubr.msk.bf16.gmra.mrb[84].mxu0 %vm853_vm1, %v1698_v2  ;;  %v1681_v55 = vmax.f32 %v1633_v53, 0.0 }
 0x3b5   : > { %v1628_v15 = vadd.f32 %v3537_v57, %v1627_v7  ;;  %v1679_v35 = vmax.f32 %v1625_v44, 0.0 }
 0x3b6   : > { %v1682_v8 = vmax.f32 %v1636_v41, 0.0 }
 0x3b7   : > { %v1680_v25 = vmax.f32 %v1628_v15, 0.0 }
 0x3b8   : > { %v1700_v20 = vpack.c.bf16 %v1682_v8, %v1681_v55 }
 0x3b9   : > { %v1699_v37 = vpack.c.bf16 %v1680_v25, %v1679_v35  ;;  %v2723_v1 = vpop.f32.mrb[60].mxu1  ;;  %v3590_v35 = vld [vmem:[%s3824_s10] ss:$0 sm:$0xff] }
 0x3ba   : > { %v1649_v22 = vadd.f32 %v2723_v1, %v3537_v57  ;;  %v1640_v63 = vpop.f32.mrb[61].mxu1 }
 0x3bb   : > { %v1641_v12 = vadd.f32 %v3537_v57, %v1640_v63  ;;  %v2724_v14 = vpop.f32.mrb[62].mxu1  ;;  %2753 = vmatprep.mubr.msk.bf16.mxu0 %vm853_vm1, %v1699_v37 }
 0x3bc   : > { %v1652_v9 = vadd.f32 %v2724_v14, %v3537_v57  ;;  %v1643_v2 = vpop.f32.mrb[63].mxu1  ;;  %2754 = vmatmul.mubr.msk.bf16.gmra.mrb[88].mxu0 %vm853_vm1, %v1700_v20  ;;  %v1685_v44 = vmax.f32 %v1649_v22, 0.0 }
 0x3bd   : > { %v1644_v53 = vadd.f32 %v3537_v57, %v1643_v2  ;;  %v1683_v7 = vmax.f32 %v1641_v12, 0.0 }
 0x3be   : > { %v1686_v41 = vmax.f32 %v1652_v9, 0.0 }
 0x3bf   : > { %v1684_v15 = vmax.f32 %v1644_v53, 0.0 }
 0x3c0   : > { %v1702_v55 = vpack.c.bf16 %v1686_v41, %v1685_v44 }
 0x3c1   : > { %v1701_v8 = vpack.c.bf16 %v1684_v15, %v1683_v7 }
 0x3c3   : > { %2757 = vmatprep.mubr.msk.bf16.mxu0 %vm853_vm1, %v1701_v8 }
 0x3c4   : > { %2758 = vmatmul.mubr.msk.bf16.gmra.mrb[92].mxu0 %vm853_vm1, %v1702_v55 }
 0x45f   : > { %v2731_v25 = vpop.f32.mrb[64].mxu0 }
 0x460   : > { %v1817_v20 = vadd.f32 %v2731_v25, %v3590_v35  ;;  %v1808_v37 = vpop.f32.mrb[65].mxu0 }
 0x461   : > { %v1809_v57 = vadd.f32 %v3590_v35, %v1808_v37  ;;  %v2732_v1 = vpop.f32.mrb[66].mxu0 }
 0x462   : > { %v1937_v22 = vadd.f32 %v1817_v20, %v1377_v62  ;;  %v1820_v63 = vadd.f32 %v2732_v1, %v3590_v35  ;;  %v1811_v12 = vpop.f32.mrb[67].mxu0 }
 0x463   : > { %v1935_v14 = vadd.f32 %v1809_v57, %v1375_v24  ;;  %v1812_v9 = vadd.f32 %v3590_v35, %v1811_v12 }
 0x464   : > { %v1938_v2 = vadd.f32 %v1820_v63, %v1378_v39  ;;  %v1969_v44 = vmax.f32 %v1937_v22, 0.0 }
 0x465   : > { %v1936_v53 = vadd.f32 %v1812_v9, %v1376_v31  ;;  %v1967_v7 = vmax.f32 %v1935_v14, 0.0 }
 0x466   : > { %v1970_v41 = vmax.f32 %v1938_v2, 0.0 }
 0x467   : > { %v1968_v15 = vmax.f32 %v1936_v53, 0.0  ;;  %v2735_v21 = vpop.f32.mrb[68].mxu0 }
 0x468   : > { %v2000_v62 = vpack.c.bf16 %v1970_v41, %v1969_v44  ;;  %v1833_v55 = vadd.f32 %v2735_v21, %v3590_v35  ;;  %v1824_v8 = vpop.f32.mrb[69].mxu0 }
 0x469   : > { %v1999_v25 = vpack.c.bf16 %v1968_v15, %v1967_v7  ;;  %v1825_v11 = vadd.f32 %v3590_v35, %v1824_v8  ;;  %v2736_v24 = vpop.f32.mrb[70].mxu0 }
 0x46a   : > { %v1941_v51 = vadd.f32 %v1833_v55, %v1381_v40  ;;  %v1836_v39 = vadd.f32 %v2736_v24, %v3590_v35  ;;  %v1827_v48 = vpop.f32.mrb[71].mxu0 }
 0x46b   : > { %v1939_v31 = vadd.f32 %v1825_v11, %v1379_v45  ;;  %v1828_v20 = vadd.f32 %v3590_v35, %v1827_v48  ;;  %2765 = vmatprep.mubr.msk.bf16.mxu1 %vm853_vm1, %v1999_v25  ;;  %v3887_v48 = vmax.f32 %v3376_v10, 0.0 }
 0x46c   : > { %v1942_v37 = vadd.f32 %v1836_v39, %v1382_v38  ;;  %2766 = vmatmul.mubr.msk.bf16.vlgmr.msra.gmra.mrb[64].mxu1 %vm853_vm1, %v2000_v62  ;;  %v1973_v3 = vmax.f32 %v1941_v51, 0.0  ;;  %v3886_v51 = vmax.f32 %v3371_v34, 0.0  ;;  %v3888_v34 = vmax.f32 %v3401_v46, 0.0 }
 0x46d   : > { %v1940_v57 = vadd.f32 %v1828_v20, %v1380_v6  ;;  %v1971_v1 = vmax.f32 %v1939_v31, 0.0 }
 0x46e   : > { %v1974_v40 = vmax.f32 %v1942_v37, 0.0 }
 0x46f   : > { %v1972_v22 = vmax.f32 %v1940_v57, 0.0  ;;  %v2739_v63 = vpop.f32.mrb[72].mxu0 }
 0x470   : > { %v2002_v12 = vpack.c.bf16 %v1974_v40, %v1973_v3  ;;  %v1849_v56 = vadd.f32 %v2739_v63, %v3590_v35  ;;  %v1840_v45 = vpop.f32.mrb[73].mxu0 }
 0x471   : > { %v2001_v14 = vpack.c.bf16 %v1972_v22, %v1971_v1  ;;  %v1841_v9 = vadd.f32 %v3590_v35, %v1840_v45  ;;  %v2740_v2 = vpop.f32.mrb[74].mxu0  ;;  %v3889_v45 = vmax.f32 %v3395_v23, 0.0 }
 0x472   : > { %v1945_v36 = vadd.f32 %v1849_v56, %v1385_v54  ;;  %v1852_v38 = vadd.f32 %v2740_v2, %v3590_v35  ;;  %v1843_v28 = vpop.f32.mrb[75].mxu0  ;;  %v3890_v2 = vmax.f32 %v3405_v0, 0.0  ;;  %v3892_v0 = vmax.f32 %v3435_v19, 0.0 }
 0x473   : > { %v1943_v6 = vadd.f32 %v1841_v9, %v1383_v59  ;;  %v1844_v53 = vadd.f32 %v3590_v35, %v1843_v28  ;;  %2769 = vmatprep.mubr.msk.bf16.mxu1 %vm853_vm1, %v2001_v14 }
 0x474   : > { %v1946_v44 = vadd.f32 %v1852_v38, %v1386_v52  ;;  %2770 = vmatmul.mubr.msk.bf16.gmra.mrb[68].mxu1 %vm853_vm1, %v2002_v12  ;;  %v1977_v27 = vmax.f32 %v1945_v36, 0.0  ;;  %v3891_v38 = vmax.f32 %v3410_v58, 0.0 }
 0x475   : > { %v1944_v41 = vadd.f32 %v1844_v53, %v1384_v32  ;;  %v1975_v7 = vmax.f32 %v1943_v6, 0.0  ;;  %v3885_v32 = vmax.f32 %v3361_v47, 0.0 }
 0x476   : > { %v1978_v54 = vmax.f32 %v1946_v44, 0.0 }
 0x477   : > { %v1976_v15 = vmax.f32 %v1944_v41, 0.0  ;;  %v2743_v21 = vpop.f32.mrb[76].mxu0 }
 0x478   : > { %v2004_v62 = vpack.c.bf16 %v1978_v54, %v1977_v27  ;;  %v1865_v26 = vadd.f32 %v2743_v21, %v3590_v35  ;;  %v1856_v59 = vpop.f32.mrb[77].mxu0 }
 0x479   : > { %v2003_v55 = vpack.c.bf16 %v1976_v15, %v1975_v7  ;;  %v1857_v8 = vadd.f32 %v3590_v35, %v1856_v59  ;;  %v2744_v25 = vpop.f32.mrb[78].mxu0  ;;  %v3893_v59 = vmax.f32 %v3429_v5, 0.0 }
 0x47a   : > { %v1949_v29 = vadd.f32 %v1865_v26, %v1389_v4  ;;  %v1868_v52 = vadd.f32 %v2744_v25, %v3590_v35  ;;  %v1859_v30 = vpop.f32.mrb[79].mxu0  ;;  %v3894_v25 = vmax.f32 %v3439_v33, 0.0  ;;  %v3896_v33 = vmax.f32 %v3469_v50, 0.0 }
 0x47b   : > { %v1947_v11 = vadd.f32 %v1857_v8, %v3885_v32  ;;  %v1860_v24 = vadd.f32 %v3590_v35, %v1859_v30  ;;  %2773 = vmatprep.mubr.msk.bf16.mxu1 %vm853_vm1, %v2003_v55 }
 0x47c   : > { %v1950_v39 = vadd.f32 %v1868_v52, %v3886_v51  ;;  %2774 = vmatmul.mubr.msk.bf16.gmra.mrb[72].mxu1 %vm853_vm1, %v2004_v62  ;;  %v1981_v43 = vmax.f32 %v1949_v29, 0.0  ;;  %v3895_v52 = vmax.f32 %v3444_v16, 0.0 }
 0x47d   : > { %v1948_v31 = vadd.f32 %v1860_v24, %v3887_v48  ;;  %v1979_v20 = vmax.f32 %v1947_v11, 0.0 }
 0x47e   : > { %v1982_v4 = vmax.f32 %v1950_v39, 0.0 }
 0x47f   : > { %v1980_v37 = vmax.f32 %v1948_v31, 0.0  ;;  %v2747_v57 = vpop.f32.mrb[80].mxu0 }
 0x480   : > { %v2006_v3 = vpack.c.bf16 %v1982_v4, %v1981_v43  ;;  %v1881_v47 = vadd.f32 %v2747_v57, %v3590_v35  ;;  %v1872_v40 = vpop.f32.mrb[81].mxu0  ;;  %v3897_v57 = vmax.f32 %v3463_v60, 0.0 }
 0x481   : > { %v2005_v1 = vpack.c.bf16 %v1980_v37, %v1979_v20  ;;  %v1873_v22 = vadd.f32 %v3590_v35, %v1872_v40  ;;  %v2748_v63 = vpop.f32.mrb[82].mxu0  ;;  %v3898_v40 = vmax.f32 %v3473_v18, 0.0  ;;  %v3900_v18 = vmax.f32 %v3503_v17, 0.0 }
 0x482   : > { %v1953_v12 = vadd.f32 %v1881_v47, %v3888_v34  ;;  %v1884_v56 = vadd.f32 %v2748_v63, %v3590_v35  ;;  %v1875_v10 = vpop.f32.mrb[83].mxu0 }
 0x483   : > { %v1951_v14 = vadd.f32 %v1873_v22, %v3889_v45  ;;  %v1876_v9 = vadd.f32 %v3590_v35, %v1875_v10  ;;  %2777 = vmatprep.mubr.msk.bf16.mxu1 %vm853_vm1, %v2005_v1  ;;  %v3899_v22 = vmax.f32 %v3478_v42, 0.0 }
 0x484   : > { %v1954_v36 = vadd.f32 %v1884_v56, %v3890_v2  ;;  %2778 = vmatmul.mubr.msk.bf16.gmra.mrb[76].mxu1 %vm853_vm1, %v2006_v3  ;;  %v1985_v46 = vmax.f32 %v1953_v12, 0.0 }
 0x485   : > { %v1952_v28 = vadd.f32 %v1876_v9, %v3891_v38  ;;  %v1983_v53 = vmax.f32 %v1951_v14, 0.0 }
 0x486   : > { %v1986_v6 = vmax.f32 %v1954_v36, 0.0 }
 0x487   : > { %v1984_v44 = vmax.f32 %v1952_v28, 0.0  ;;  %v2751_v41 = vpop.f32.mrb[84].mxu0 }
 0x488   : > { %v2008_v27 = vpack.c.bf16 %v1986_v6, %v1985_v46  ;;  %v1897_v23 = vadd.f32 %v2751_v41, %v3590_v35  ;;  %v1888_v54 = vpop.f32.mrb[85].mxu0  ;;  %v3901_v46 = vmax.f32 %v3497_v61, 0.0 }
 0x489   : > { %v2007_v7 = vpack.c.bf16 %v1984_v44, %v1983_v53  ;;  %v1889_v15 = vadd.f32 %v3590_v35, %v1888_v54  ;;  %v2752_v21 = vpop.f32.mrb[86].mxu0  ;;  %v3902_v44 = vmax.f32 %v3507_v49, 0.0  ;;  %v3708_v49 = vld [vmem:[%s3826_s12] ss:$0 sm:$0xff] }
 0x48a   : > { %v1957_v62 = vadd.f32 %v1897_v23, %v3892_v0  ;;  %v1900_v26 = vadd.f32 %v2752_v21, %v3590_v35  ;;  %v1891_v58 = vpop.f32.mrb[87].mxu0 }
 0x48b   : > { %v1955_v55 = vadd.f32 %v1889_v15, %v3893_v59  ;;  %v1892_v8 = vadd.f32 %v3590_v35, %v1891_v58  ;;  %2781 = vmatprep.mubr.msk.bf16.mxu1 %vm853_vm1, %v2007_v7 }
 0x48c   : > { %v1958_v29 = vadd.f32 %v1900_v26, %v3894_v25  ;;  %2782 = vmatmul.mubr.msk.bf16.gmra.mrb[80].mxu1 %vm853_vm1, %v2008_v27  ;;  %v1989_v19 = vmax.f32 %v1957_v62, 0.0  ;;  %v3903_v27 = vmax.f32 %v3512_v13, 0.0 }
 0x48d   : > { %v1956_v30 = vadd.f32 %v1892_v8, %v3895_v52  ;;  %v1987_v11 = vmax.f32 %v1955_v55, 0.0 }
 0x48e   : > { %v1990_v32 = vmax.f32 %v1958_v29, 0.0 }
 0x48f   : > { %v1988_v24 = vmax.f32 %v1956_v30, 0.0  ;;  %v2755_v51 = vpop.f32.mrb[88].mxu0 }
 0x490   : > { %v2010_v39 = vpack.c.bf16 %v1990_v32, %v1989_v19  ;;  %v1913_v5 = vadd.f32 %v2755_v51, %v3590_v35  ;;  %v1904_v48 = vpop.f32.mrb[89].mxu0 }
 0x491   : > { %v2009_v31 = vpack.c.bf16 %v1988_v24, %v1987_v11  ;;  %v1905_v43 = vadd.f32 %v3590_v35, %v1904_v48  ;;  %v2756_v4 = vpop.f32.mrb[90].mxu0 }
 0x492   : > { %v1961_v20 = vadd.f32 %v1913_v5, %v3896_v33  ;;  %v1916_v37 = vadd.f32 %v2756_v4, %v3590_v35  ;;  %v1907_v16 = vpop.f32.mrb[91].mxu0 }
 0x493   : > { %v1959_v3 = vadd.f32 %v1905_v43, %v3897_v57  ;;  %v1908_v47 = vadd.f32 %v3590_v35, %v1907_v16  ;;  %2785 = vmatprep.mubr.msk.bf16.mxu1 %vm853_vm1, %v2009_v31 }
 0x494   : > { %v1962_v1 = vadd.f32 %v1916_v37, %v3898_v40  ;;  %2786 = vmatmul.mubr.msk.bf16.gmra.mrb[84].mxu1 %vm853_vm1, %v2010_v39  ;;  %v1993_v50 = vmax.f32 %v1961_v20, 0.0 }
 0x495   : > { %v1960_v63 = vadd.f32 %v1908_v47, %v3899_v22  ;;  %v1991_v12 = vmax.f32 %v1959_v3, 0.0 }
 0x496   : > { %v1994_v34 = vmax.f32 %v1962_v1, 0.0 }
 0x497   : > { %v1992_v56 = vmax.f32 %v1960_v63, 0.0  ;;  %v2759_v10 = vpop.f32.mrb[92].mxu0 }
 0x498   : > { %v2012_v45 = vpack.c.bf16 %v1994_v34, %v1993_v50  ;;  %v1929_v60 = vadd.f32 %v2759_v10, %v3590_v35  ;;  %v1920_v14 = vpop.f32.mrb[93].mxu0 }
 0x499   : > { %v2011_v9 = vpack.c.bf16 %v1992_v56, %v1991_v12  ;;  %v1921_v2 = vadd.f32 %v3590_v35, %v1920_v14  ;;  %v2760_v36 = vpop.f32.mrb[94].mxu0 }
 0x49a   : > { %v1965_v38 = vadd.f32 %v1929_v60, %v3900_v18  ;;  %v1932_v28 = vadd.f32 %v2760_v36, %v3590_v35  ;;  %v1923_v42 = vpop.f32.mrb[95].mxu0 }
 0x49b   : > { %v1963_v6 = vadd.f32 %v1921_v2, %v3901_v46  ;;  %v1924_v53 = vadd.f32 %v3590_v35, %v1923_v42  ;;  %2789 = vmatprep.mubr.msk.bf16.mxu1 %vm853_vm1, %v2011_v9 }
 0x49c   : > { %v1966_v41 = vadd.f32 %v1932_v28, %v3902_v44  ;;  %2790 = vmatmul.mubr.msk.bf16.gmra.mrb[88].mxu1 %vm853_vm1, %v2012_v45  ;;  %v1997_v23 = vmax.f32 %v1965_v38, 0.0 }
 0x49d   : > { %v1964_v17 = vadd.f32 %v1924_v53, %v3903_v27  ;;  %v1995_v7 = vmax.f32 %v1963_v6, 0.0 }
 0x49e   : > { %v1998_v54 = vmax.f32 %v1966_v41, 0.0 }
 0x49f   : > { %v1996_v15 = vmax.f32 %v1964_v17, 0.0 }
 0x4a0   : > { %v2014_v21 = vpack.c.bf16 %v1998_v54, %v1997_v23 }
 0x4a1   : > { %v2013_v0 = vpack.c.bf16 %v1996_v15, %v1995_v7 }
 0x4a3   : > { %2793 = vmatprep.mubr.msk.bf16.mxu1 %vm853_vm1, %v2013_v0 }
 0x4a4   : > { %2794 = vmatmul.mubr.msk.bf16.gmra.mrb[92].mxu1 %vm853_vm1, %v2014_v21 }
 0x53f   : > { %v2767_v13 = vpop.f32.mrb[64].mxu1 }
 0x540   : > { %v2129_v61 = vadd.f32 %v2767_v13, %v3708_v49  ;;  %v2120_v35 = vpop.f32.mrb[65].mxu1 }
 0x541   : > { %v2121_v62 = vadd.f32 %v3708_v49, %v2120_v35  ;;  %v2768_v26 = vpop.f32.mrb[66].mxu1 }
 0x542   : > { %2250 = vst.msk [vmem:[%s3713_s22 + $0x10] sm:$0xff] %vm2247_vm2, %v2129_v61  ;;  %v2132_v58 = vadd.f32 %v2768_v26, %v3708_v49  ;;  %v2123_v59 = vpop.f32.mrb[67].mxu1 }
 0x543   : > { %2248 = vst.msk [vmem:[%s3713_s22] sm:$0xff] %vm2247_vm2, %v2121_v62  ;;  %v2124_v55 = vadd.f32 %v3708_v49, %v2123_v59 }
 0x544   : > { %2251 = vst.msk [vmem:[%s3713_s22 + $0x18] sm:$0xff] %vm2247_vm2, %v2132_v58 }
 0x545   : > { %2249 = vst.msk [vmem:[%s3713_s22 + $0x8] sm:$0xff] %vm2247_vm2, %v2124_v55 }
 0x547   : > { %v2771_v8 = vpop.f32.mrb[68].mxu1 }
 0x548   : > { %v2145_v25 = vadd.f32 %v2771_v8, %v3708_v49  ;;  %v2136_v29 = vpop.f32.mrb[69].mxu1 }
 0x549   : > { %v2137_v52 = vadd.f32 %v3708_v49, %v2136_v29  ;;  %v2772_v30 = vpop.f32.mrb[70].mxu1 }
 0x54a   : > { %2254 = vst.msk [vmem:[%s3713_s22 + $0x30] sm:$0xff] %vm2247_vm2, %v2145_v25  ;;  %v2148_v19 = vadd.f32 %v2772_v30, %v3708_v49  ;;  %v2139_v32 = vpop.f32.mrb[71].mxu1 }
 0x54b   : > { %2252 = vst.msk [vmem:[%s3713_s22 + $0x20] sm:$0xff] %vm2247_vm2, %v2137_v52  ;;  %v2140_v11 = vadd.f32 %v3708_v49, %v2139_v32 }
 0x54c   : > { %2255 = vst.msk [vmem:[%s3713_s22 + $0x38] sm:$0xff] %vm2247_vm2, %v2148_v19 }
 0x54d   : > { %2253 = vst.msk [vmem:[%s3713_s22 + $0x28] sm:$0xff] %vm2247_vm2, %v2140_v11 }
 0x54f   : > { %v2775_v24 = vpop.f32.mrb[72].mxu1 }
 0x550   : > { %v2161_v51 = vadd.f32 %v2775_v24, %v3708_v49  ;;  %v2152_v39 = vpop.f32.mrb[73].mxu1 }
 0x551   : > { %v2153_v5 = vadd.f32 %v3708_v49, %v2152_v39  ;;  %v2776_v48 = vpop.f32.mrb[74].mxu1 }
 0x552   : > { %2258 = vst.msk [vmem:[%s3713_s22 + $0x50] sm:$0xff] %vm2247_vm2, %v2161_v51  ;;  %v2164_v31 = vadd.f32 %v2776_v48, %v3708_v49  ;;  %v2155_v43 = vpop.f32.mrb[75].mxu1 }
 0x553   : > { %2256 = vst.msk [vmem:[%s3713_s22 + $0x40] sm:$0xff] %vm2247_vm2, %v2153_v5  ;;  %v2156_v4 = vadd.f32 %v3708_v49, %v2155_v43 }
 0x554   : > { %2259 = vst.msk [vmem:[%s3713_s22 + $0x58] sm:$0xff] %vm2247_vm2, %v2164_v31 }
 0x555   : > { %2257 = vst.msk [vmem:[%s3713_s22 + $0x48] sm:$0xff] %vm2247_vm2, %v2156_v4 }
 0x557   : > { %v2779_v33 = vpop.f32.mrb[76].mxu1 }
 0x558   : > { %v2177_v20 = vadd.f32 %v2779_v33, %v3708_v49  ;;  %v2168_v37 = vpop.f32.mrb[77].mxu1 }
 0x559   : > { %v2169_v16 = vadd.f32 %v3708_v49, %v2168_v37  ;;  %v2780_v57 = vpop.f32.mrb[78].mxu1 }
 0x55a   : > { %2262 = vst.msk [vmem:[%s3713_s22 + $0x70] sm:$0xff] %vm2247_vm2, %v2177_v20  ;;  %v2180_v3 = vadd.f32 %v2780_v57, %v3708_v49  ;;  %v2171_v47 = vpop.f32.mrb[79].mxu1 }
 0x55b   : > { %2260 = vst.msk [vmem:[%s3713_s22 + $0x60] sm:$0xff] %vm2247_vm2, %v2169_v16  ;;  %v2172_v40 = vadd.f32 %v3708_v49, %v2171_v47 }
 0x55c   : > { %2263 = vst.msk [vmem:[%s3713_s22 + $0x78] sm:$0xff] %vm2247_vm2, %v2180_v3 }
 0x55d   : > { %2261 = vst.msk [vmem:[%s3713_s22 + $0x68] sm:$0xff] %vm2247_vm2, %v2172_v40 }
 0x55f   : > { %v2783_v1 = vpop.f32.mrb[80].mxu1 }
 0x560   : > { %v2193_v22 = vadd.f32 %v2783_v1, %v3708_v49  ;;  %v2184_v63 = vpop.f32.mrb[81].mxu1 }
 0x561   : > { %v2185_v50 = vadd.f32 %v3708_v49, %v2184_v63  ;;  %v2784_v34 = vpop.f32.mrb[82].mxu1 }
 0x562   : > { %2266 = vst.msk [vmem:[%s3713_s22 + $0x90] sm:$0xff] %vm2247_vm2, %v2193_v22  ;;  %v2196_v12 = vadd.f32 %v2784_v34, %v3708_v49  ;;  %v2187_v56 = vpop.f32.mrb[83].mxu1 }
 0x563   : > { %2264 = vst.msk [vmem:[%s3713_s22 + $0x80] sm:$0xff] %vm2247_vm2, %v2185_v50  ;;  %v2188_v10 = vadd.f32 %v3708_v49, %v2187_v56 }
 0x564   : > { %2267 = vst.msk [vmem:[%s3713_s22 + $0x98] sm:$0xff] %vm2247_vm2, %v2196_v12 }
 0x565   : > { %2265 = vst.msk [vmem:[%s3713_s22 + $0x88] sm:$0xff] %vm2247_vm2, %v2188_v10 }
 0x567   : > { %v2787_v45 = vpop.f32.mrb[84].mxu1 }
 0x568   : > { %v2209_v60 = vadd.f32 %v2787_v45, %v3708_v49  ;;  %v2200_v14 = vpop.f32.mrb[85].mxu1 }
 0x569   : > { %v2201_v9 = vadd.f32 %v3708_v49, %v2200_v14  ;;  %v2788_v2 = vpop.f32.mrb[86].mxu1 }
 0x56a   : > { %2270 = vst.msk [vmem:[%s3713_s22 + $0xb0] sm:$0xff] %vm2247_vm2, %v2209_v60  ;;  %v2212_v36 = vadd.f32 %v2788_v2, %v3708_v49  ;;  %v2203_v18 = vpop.f32.mrb[87].mxu1 }
 0x56b   : > { %2268 = vst.msk [vmem:[%s3713_s22 + $0xa0] sm:$0xff] %vm2247_vm2, %v2201_v9  ;;  %v2204_v38 = vadd.f32 %v3708_v49, %v2203_v18 }
 0x56c   : > { %2271 = vst.msk [vmem:[%s3713_s22 + $0xb8] sm:$0xff] %vm2247_vm2, %v2212_v36 }
 0x56d   : > { %2269 = vst.msk [vmem:[%s3713_s22 + $0xa8] sm:$0xff] %vm2247_vm2, %v2204_v38 }
 0x56f   : > { %v2791_v28 = vpop.f32.mrb[88].mxu1 }
 0x570   : > { %v2225_v42 = vadd.f32 %v2791_v28, %v3708_v49  ;;  %v2216_v46 = vpop.f32.mrb[89].mxu1 }
 0x571   : > { %v2217_v6 = vadd.f32 %v3708_v49, %v2216_v46  ;;  %v2792_v53 = vpop.f32.mrb[90].mxu1 }
 0x572   : > { %2274 = vst.msk [vmem:[%s3713_s22 + $0xd0] sm:$0xff] %vm2247_vm2, %v2225_v42  ;;  %v2228_v44 = vadd.f32 %v2792_v53, %v3708_v49  ;;  %v2219_v41 = vpop.f32.mrb[91].mxu1 }
 0x573   : > { %2272 = vst.msk [vmem:[%s3713_s22 + $0xc0] sm:$0xff] %vm2247_vm2, %v2217_v6  ;;  %v2220_v27 = vadd.f32 %v3708_v49, %v2219_v41 }
 0x574   : > { %2275 = vst.msk [vmem:[%s3713_s22 + $0xd8] sm:$0xff] %vm2247_vm2, %v2228_v44 }
 0x575   : > { %2273 = vst.msk [vmem:[%s3713_s22 + $0xc8] sm:$0xff] %vm2247_vm2, %v2220_v27 }
 0x577   : > { %v2795_v17 = vpop.f32.mrb[92].mxu1 }
 0x578   : > { %v2241_v23 = vadd.f32 %v2795_v17, %v3708_v49  ;;  %v2232_v54 = vpop.f32.mrb[93].mxu1 }
 0x579   : > { %v2233_v7 = vadd.f32 %v3708_v49, %v2232_v54  ;;  %v2796_v15 = vpop.f32.mrb[94].mxu1 }
 0x57a   : > { %2278 = vst.msk [vmem:[%s3713_s22 + $0xf0] sm:$0xff] %vm2247_vm2, %v2241_v23  ;;  %v2244_v21 = vadd.f32 %v2796_v15, %v3708_v49  ;;  %v2235_v0 = vpop.f32.mrb[95].mxu1 }
 0x57b   : > { %2276 = vst.msk [vmem:[%s3713_s22 + $0xe0] sm:$0xff] %vm2247_vm2, %v2233_v7  ;;  %v2236_v13 = vadd.f32 %v3708_v49, %v2235_v0 }
 0x57c   : > { %2279 = vst.msk [vmem:[%s3713_s22 + $0xf8] sm:$0xff] %vm2247_vm2, %v2244_v21 }
 0x57d   : > { %2277 = vst.msk [vmem:[%s3713_s22 + $0xe8] sm:$0xff] %vm2247_vm2, %v2236_v13 }
 0x57e PF: > { %s23_s25 = sadd.s32 1, %s2838_s25  }
 0x57f   : > { %p20_p4 = scmp.ge.s32.totalorder %s23_s25, 4  }
 0x581   :  { %22 = sbr.rel (!%p20_p4) target bundleno = 1 (0x1), region = 102 }

</bundles_post_ra>
